<compile_context>
chip_gen: v6e
topology: v6e:2x2x1
jax: 0.10.0
libtpu: 0.0.40
codegen_flags: <defaults>
</compile_context>

<pallas_src>
import jax
import jax.numpy as jnp
from jax.experimental import pallas as pl
from jax.experimental.pallas import tpu as pltpu


def _round_up(x, m):
    return ((x + m - 1) // m) * m


def pcg_kernel(x_ref,
               w1_ref, b1_ref,
               w2_ref, b2_ref,
               w3_ref, b3_ref,
               w4_ref, b4_ref,
               wfc_ref, bfc_ref,
               out_ref,
               h_ref):
    """Grid = (NJ fc-output tiles [outer], NI batch tiles [inner]).

    The decoder MLP runs only on the first j-pass (j == 0); its post-relu
    hidden state for batch tile i is cached in the (NI, tm, hidden) bf16 VMEM
    scratch and reused for every fc output tile.  Because the wfc block index
    depends only on j (the outer axis), each wfc tile is DMA'd exactly once.
    """
    i = pl.program_id(1)

    @pl.when(pl.program_id(0) == 0)
    def _():
        h = jnp.dot(x_ref[...], w1_ref[...],
                    preferred_element_type=jnp.float32) + b1_ref[...]
        h = jnp.maximum(h, 0.0).astype(jnp.bfloat16)
        h = jnp.dot(h, w2_ref[...],
                    preferred_element_type=jnp.float32) + b2_ref[...]
        h = jnp.maximum(h, 0.0).astype(jnp.bfloat16)
        h = jnp.dot(h, w3_ref[...],
                    preferred_element_type=jnp.float32) + b3_ref[...]
        h = jnp.maximum(h, 0.0).astype(jnp.bfloat16)
        h = jnp.dot(h, w4_ref[...],
                    preferred_element_type=jnp.float32) + b4_ref[...]
        # generator-level activation on the decoder output (de_activation='relu')
        h = jnp.maximum(h, 0.0)
        h_ref[i] = h.astype(jnp.bfloat16)

    # fc tile: (tm, hidden) @ (hidden, tn) + (1, tn), f32 accumulation.
    out_ref[...] = (jnp.dot(h_ref[i], wfc_ref[...],
                            preferred_element_type=jnp.float32)
                    + bfc_ref[...]).astype(out_ref.dtype)


def prepare_params(params, npoints):
    """One-time weight preprocessing (hoisted out of the per-call path).

    Casts decoder weights to bf16, zero-pads wfc/bfc to a lane-dense tile
    multiple, and records the fc tiling.  The returned dict is reused across
    forward calls so no per-call cast/pad cost is paid.
    """
    (w1, b1, w2, b2, w3, b3, w4, b4, wfc, bfc) = params
    hidden = wfc.shape[0]
    out_dim = npoints * 3
    assert wfc.shape[1] == out_dim and bfc.shape[-1] == out_dim

    # fc output (N) tiling: big lane-dense tiles; pad out_pad up to a tile
    # multiple (wrapper slices the padding off).  No tn=128 fallback.
    if out_dim <= 2048:
        tn = _round_up(out_dim, 128)
    else:
        tn = 1024
    out_pad = _round_up(out_dim, tn)

    bf16 = jnp.bfloat16
    wfc_p = jnp.zeros((hidden, out_pad), bf16).at[:, :out_dim].set(wfc.astype(bf16))
    bfc_p = jnp.zeros((1, out_pad), jnp.float32).at[:, :out_dim].set(
        bfc.reshape(1, out_dim).astype(jnp.float32))

    return {
        "w1": w1.astype(bf16), "b1": b1.astype(jnp.float32),
        "w2": w2.astype(bf16), "b2": b2.astype(jnp.float32),
        "w3": w3.astype(bf16), "b3": b3.astype(jnp.float32),
        "w4": w4.astype(bf16), "b4": b4.astype(jnp.float32),
        "wfc": wfc_p, "bfc": bfc_p,
        "hidden": hidden, "out_dim": out_dim, "out_pad": out_pad,
        "tn": tn, "npoints": npoints,
    }


def point_cloud_generator_forward(x, prep):
    """x: (B, latent_dim) f32. prep: output of prepare_params.
    Returns (B, 3, npoints) f32."""
    B, latent = x.shape
    hidden = prep["hidden"]
    out_dim = prep["out_dim"]
    out_pad = prep["out_pad"]
    tn = prep["tn"]
    npoints = prep["npoints"]
    bf16 = jnp.bfloat16

    # Chunk very large batches so the full-batch hidden cache stays <= ~8 MiB
    # of VMEM (B_pad * hidden * 2 bytes).
    max_rows = max(256, ((8 * 1024 * 1024) // (hidden * 2)) // 256 * 256)
    if B > max_rows:
        parts = [point_cloud_generator_forward(x[s:s + max_rows], prep)
                 for s in range(0, B, max_rows)]
        return jnp.concatenate(parts, axis=0)

    # --- batch (M) tiling: fill the 256-wide MXU on v6e/v7x when batch allows;
    #     round small batches to the bf16 16-row packing granule.
    if B >= 256:
        tm = 256
    elif B >= 128:
        tm = 128
    else:
        tm = _round_up(B, 16)
    B_pad = _round_up(B, tm)

    ni = B_pad // tm
    nj = out_pad // tn
    grid = (nj, ni)          # j (fc tiles) OUTER, i (batch tiles) INNER

    # pad / cast the activation input only (weights already prepared)
    x_p = jnp.zeros((B_pad, latent), bf16).at[:B, :].set(x.astype(bf16))

    w1, b1 = prep["w1"], prep["b1"]
    w2, b2 = prep["w2"], prep["b2"]
    w3, b3 = prep["w3"], prep["b3"]
    w4, b4 = prep["w4"], prep["b4"]
    wfc_p, bfc_p = prep["wfc"], prep["bfc"]

    def _const(shape):
        # constant block index -> DMA'd once, resident for the whole grid
        return pl.BlockSpec(shape, lambda j, i: (0,) * len(shape))

    in_specs = [
        pl.BlockSpec((tm, latent), lambda j, i: (i, 0)),      # x batch tile
        _const(w1.shape), _const(b1.shape),
        _const(w2.shape), _const(b2.shape),
        _const(w3.shape), _const(b3.shape),
        _const(w4.shape), _const(b4.shape),
        pl.BlockSpec((hidden, tn), lambda j, i: (0, j)),      # wfc N-tile (once per j)
        pl.BlockSpec((1, tn), lambda j, i: (0, j)),           # bfc N-tile
    ]
    out_specs = pl.BlockSpec((tm, tn), lambda j, i: (i, j))

    # advisory cost estimate (wfc / decoder weights counted once, as executed)
    flops = 2 * B_pad * (w1.shape[0] * w1.shape[1]
                         + w2.shape[0] * w2.shape[1]
                         + w3.shape[0] * w3.shape[1]
                         + w4.shape[0] * w4.shape[1]
                         + hidden * out_pad)
    bytes_accessed = (nj * B_pad * latent * 2                       # x per j-pass
                      + (w1.size + w2.size + w3.size + w4.size) * 2
                      + (b1.size + b2.size + b3.size + b4.size) * 4
                      + wfc_p.size * 2 + bfc_p.size * 4             # once each
                      + B_pad * out_pad * 4)                        # output write

    out = pl.pallas_call(
        pcg_kernel,
        out_shape=jax.ShapeDtypeStruct((B_pad, out_pad), jnp.float32),
        grid=grid,
        in_specs=in_specs,
        out_specs=out_specs,
        scratch_shapes=[pltpu.VMEM((ni, tm, hidden), bf16)],   # all-hidden cache
        compiler_params=pltpu.CompilerParams(
            # j carries the hidden-cache dependency -> sequential; i kept
            # sequential too (see module header note on megacore).
            dimension_semantics=("arbitrary", "arbitrary"),
            vmem_limit_bytes=48 * 1024 * 1024),
        cost_estimate=pl.CostEstimate(flops=int(flops),
                                      transcendentals=0,
                                      bytes_accessed=int(bytes_accessed)),
    )(x_p, w1, b1, w2, b2, w3, b3, w4, b4, wfc_p, bfc_p)

    # slice off batch / lane padding, then output.reshape(-1, 3, npoints)
    return out[:B, :out_dim].reshape(B, 3, npoints)


def init_params(key, latent_dim, de_filters, npoints):
    """Deterministic synthetic weights; layout (in, out), biases (1, out), f32."""
    dims = [latent_dim] + list(de_filters)
    params = []
    for i in range(len(dims) - 1):
        key, kw, kb = jax.random.split(key, 3)
        fan_in, fan_out = dims[i], dims[i + 1]
        scale = 1.0 / jnp.sqrt(jnp.float32(fan_in))
        params.append(jax.random.normal(kw, (fan_in, fan_out), jnp.float32) * scale)
        params.append(jax.random.normal(kb, (1, fan_out), jnp.float32) * scale)
    # final fc: de_filters[-1] -> npoints * 3
    key, kw, kb = jax.random.split(key, 3)
    fan_in, fan_out = de_filters[-1], npoints * 3
    scale = 1.0 / jnp.sqrt(jnp.float32(fan_in))
    params.append(jax.random.normal(kw, (fan_in, fan_out), jnp.float32) * scale)
    params.append(jax.random.normal(kb, (1, fan_out), jnp.float32) * scale)
    return tuple(params)


def reference_forward(x, params, npoints):
    """Pure-JAX reference of the same math (bf16 matmul inputs, f32 accum)."""
    (w1, b1, w2, b2, w3, b3, w4, b4, wfc, bfc) = params
    bf16 = jnp.bfloat16

    def mm(a, w):
        return jnp.dot(a.astype(bf16), w.astype(bf16),
                       preferred_element_type=jnp.float32)

    h = jnp.maximum(mm(x, w1) + b1, 0.0)
    h = jnp.maximum(mm(h, w2) + b2, 0.0)
    h = jnp.maximum(mm(h, w3) + b3, 0.0)
    h = mm(h, w4) + b4
    h = jnp.maximum(h, 0.0)
    out = mm(h, wfc) + bfc
    return out.reshape(-1, 3, npoints)


if __name__ == "__main__":
    latent_dim = 32
    npoints = 64
    de_filters = [64, 128, 512, 1024]
    B = 8

    key = jax.random.PRNGKey(0)
    key, kx = jax.random.split(key)
    x = jax.random.normal(kx, (B, latent_dim), jnp.float32)

    params = init_params(key, latent_dim, de_filters, npoints)

    # one-time weight preprocessing, reused across forward calls
    prep = prepare_params(params, npoints)

    out = point_cloud_generator_forward(x, prep)
    out = jax.block_until_ready(out)

    ref = reference_forward(x, params, npoints)
    assert out.shape == (B, 3, npoints), out.shape
    assert jnp.allclose(out, ref, atol=1e-2, rtol=1e-2), (
        "mismatch vs reference: max abs diff = %f"
        % float(jnp.max(jnp.abs(out - ref))))

    print("KERNEL_OK")
</pallas_src>

<mosaic_0001>
module attributes {stable_mosaic.version = 11 : i64} {
  func.func @pcg_kernel(%arg0: i32, %arg1: i32, %arg2: memref<16x32xbf16, #tpu.memory_space<vmem>>, %arg3: memref<32x64xbf16, #tpu.memory_space<vmem>>, %arg4: memref<1x64xf32, #tpu.memory_space<vmem>>, %arg5: memref<64x128xbf16, #tpu.memory_space<vmem>>, %arg6: memref<1x128xf32, #tpu.memory_space<vmem>>, %arg7: memref<128x512xbf16, #tpu.memory_space<vmem>>, %arg8: memref<1x512xf32, #tpu.memory_space<vmem>>, %arg9: memref<512x1024xbf16, #tpu.memory_space<vmem>>, %arg10: memref<1x1024xf32, #tpu.memory_space<vmem>>, %arg11: memref<1024x256xbf16, #tpu.memory_space<vmem>>, %arg12: memref<1x256xf32, #tpu.memory_space<vmem>>, %arg13: memref<16x256xf32, #tpu.memory_space<vmem>>, %arg14: memref<1x16x1024xbf16, #tpu.memory_space<vmem>>) attributes {dimension_semantics = [#tpu.dimension_semantics<arbitrary>, #tpu.dimension_semantics<arbitrary>], iteration_bounds = array<i64: 1, 1>, scalar_prefetch = 0 : i64, scratch_operands = 1 : i64, tpu.core_type = #tpu.core_type<tc>, window_params = [{transform_indices = @transform_0, window_bounds = array<i64: 16, 32>}, {pipeline_mode = #tpu.pipeline_mode<synchronous>, transform_indices = @transform_1, window_bounds = array<i64: 32, 64>}, {pipeline_mode = #tpu.pipeline_mode<synchronous>, transform_indices = @transform_2, window_bounds = array<i64: 1, 64>}, {pipeline_mode = #tpu.pipeline_mode<synchronous>, transform_indices = @transform_3, window_bounds = array<i64: 64, 128>}, {pipeline_mode = #tpu.pipeline_mode<synchronous>, transform_indices = @transform_4, window_bounds = array<i64: 1, 128>}, {pipeline_mode = #tpu.pipeline_mode<synchronous>, transform_indices = @transform_5, window_bounds = array<i64: 128, 512>}, {pipeline_mode = #tpu.pipeline_mode<synchronous>, transform_indices = @transform_6, window_bounds = array<i64: 1, 512>}, {pipeline_mode = #tpu.pipeline_mode<synchronous>, transform_indices = @transform_7, window_bounds = array<i64: 512, 1024>}, {pipeline_mode = #tpu.pipeline_mode<synchronous>, transform_indices = @transform_8, window_bounds = array<i64: 1, 1024>}, {transform_indices = @transform_9, window_bounds = array<i64: 1024, 256>}, {transform_indices = @transform_10, window_bounds = array<i64: 1, 256>}, {transform_indices = @transform_11, window_bounds = array<i64: 16, 256>}]} {
    %c0_i32 = arith.constant 0 : i32
    %0 = arith.cmpi eq, %arg0, %c0_i32 : i32
    %1 = arith.extui %0 : i1 to i32
    %c0_i32_0 = arith.constant 0 : i32
    %2 = arith.cmpi ne, %1, %c0_i32_0 : i32
    scf.if %2 {
      %c0_8 = arith.constant 0 : index
      %c0_9 = arith.constant 0 : index
      %12 = vector.load %arg2[%c0_8, %c0_9] : memref<16x32xbf16, #tpu.memory_space<vmem>>, vector<16x32xbf16>
      %c0_10 = arith.constant 0 : index
      %c0_11 = arith.constant 0 : index
      %13 = vector.load %arg3[%c0_10, %c0_11] : memref<32x64xbf16, #tpu.memory_space<vmem>>, vector<32x64xbf16>
      %cst_12 = arith.constant dense<0.000000e+00> : vector<16x64xf32>
      %14 = tpu.matmul %12, %13, %cst_12 {dimension_numbers = #tpu.dot_dimension_numbers<[1], [0], [0], [1], [0, 0, 1, 1], [], []>} : vector<16x32xbf16>, vector<32x64xbf16>, vector<16x64xf32> -> vector<16x64xf32>
      %c0_13 = arith.constant 0 : index
      %c0_14 = arith.constant 0 : index
      %15 = vector.load %arg4[%c0_13, %c0_14] : memref<1x64xf32, #tpu.memory_space<vmem>>, vector<1x64xf32>
      %16 = vector.broadcast %15 : vector<1x64xf32> to vector<16x64xf32>
      %17 = arith.addf %14, %16 : vector<16x64xf32>
      %cst_15 = arith.constant 0.000000e+00 : f32
      %18 = vector.broadcast %cst_15 : f32 to vector<16x64xf32>
      %19 = arith.maximumf %17, %18 : vector<16x64xf32>
      %20 = arith.truncf %19 : vector<16x64xf32> to vector<16x64xbf16>
      %c0_16 = arith.constant 0 : index
      %c0_17 = arith.constant 0 : index
      %21 = vector.load %arg5[%c0_16, %c0_17] : memref<64x128xbf16, #tpu.memory_space<vmem>>, vector<64x128xbf16>
      %cst_18 = arith.constant dense<0.000000e+00> : vector<16x128xf32>
      %22 = tpu.matmul %20, %21, %cst_18 {dimension_numbers = #tpu.dot_dimension_numbers<[1], [0], [0], [1], [0, 0, 1, 1], [], []>} : vector<16x64xbf16>, vector<64x128xbf16>, vector<16x128xf32> -> vector<16x128xf32>
      %c0_19 = arith.constant 0 : index
      %c0_20 = arith.constant 0 : index
      %23 = vector.load %arg6[%c0_19, %c0_20] : memref<1x128xf32, #tpu.memory_space<vmem>>, vector<1x128xf32>
      %24 = vector.broadcast %23 : vector<1x128xf32> to vector<16x128xf32>
      %25 = arith.addf %22, %24 : vector<16x128xf32>
      %cst_21 = arith.constant 0.000000e+00 : f32
      %26 = vector.broadcast %cst_21 : f32 to vector<16x128xf32>
      %27 = arith.maximumf %25, %26 : vector<16x128xf32>
      %28 = arith.truncf %27 : vector<16x128xf32> to vector<16x128xbf16>
      %c0_22 = arith.constant 0 : index
      %c0_23 = arith.constant 0 : index
      %29 = vector.load %arg7[%c0_22, %c0_23] : memref<128x512xbf16, #tpu.memory_space<vmem>>, vector<128x512xbf16>
      %cst_24 = arith.constant dense<0.000000e+00> : vector<16x512xf32>
      %30 = tpu.matmul %28, %29, %cst_24 {dimension_numbers = #tpu.dot_dimension_numbers<[1], [0], [0], [1], [0, 0, 1, 1], [], []>} : vector<16x128xbf16>, vector<128x512xbf16>, vector<16x512xf32> -> vector<16x512xf32>
      %c0_25 = arith.constant 0 : index
      %c0_26 = arith.constant 0 : index
      %31 = vector.load %arg8[%c0_25, %c0_26] : memref<1x512xf32, #tpu.memory_space<vmem>>, vector<1x512xf32>
      %32 = vector.broadcast %31 : vector<1x512xf32> to vector<16x512xf32>
      %33 = arith.addf %30, %32 : vector<16x512xf32>
      %cst_27 = arith.constant 0.000000e+00 : f32
      %34 = vector.broadcast %cst_27 : f32 to vector<16x512xf32>
      %35 = arith.maximumf %33, %34 : vector<16x512xf32>
      %36 = arith.truncf %35 : vector<16x512xf32> to vector<16x512xbf16>
      %c0_28 = arith.constant 0 : index
      %c0_29 = arith.constant 0 : index
      %37 = vector.load %arg9[%c0_28, %c0_29] : memref<512x1024xbf16, #tpu.memory_space<vmem>>, vector<512x1024xbf16>
      %cst_30 = arith.constant dense<0.000000e+00> : vector<16x1024xf32>
      %38 = tpu.matmul %36, %37, %cst_30 {dimension_numbers = #tpu.dot_dimension_numbers<[1], [0], [0], [1], [0, 0, 1, 1], [], []>} : vector<16x512xbf16>, vector<512x1024xbf16>, vector<16x1024xf32> -> vector<16x1024xf32>
      %c0_31 = arith.constant 0 : index
      %c0_32 = arith.constant 0 : index
      %39 = vector.load %arg10[%c0_31, %c0_32] : memref<1x1024xf32, #tpu.memory_space<vmem>>, vector<1x1024xf32>
      %40 = vector.broadcast %39 : vector<1x1024xf32> to vector<16x1024xf32>
      %41 = arith.addf %38, %40 : vector<16x1024xf32>
      %cst_33 = arith.constant 0.000000e+00 : f32
      %42 = vector.broadcast %cst_33 : f32 to vector<16x1024xf32>
      %43 = arith.maximumf %41, %42 : vector<16x1024xf32>
      %44 = arith.truncf %43 : vector<16x1024xf32> to vector<16x1024xbf16>
      %45 = arith.index_cast %arg1 : i32 to index
      %c0_34 = arith.constant 0 : index
      %c0_35 = arith.constant 0 : index
      %46 = vector.load %arg14[%45, %c0_34, %c0_35] : memref<1x16x1024xbf16, #tpu.memory_space<vmem>>, vector<1x16x1024xbf16>
      %47 = vector.shape_cast %46 : vector<1x16x1024xbf16> to vector<16x1024xbf16>
      %48 = vector.shape_cast %44 : vector<16x1024xbf16> to vector<1x16x1024xbf16>
      tpu.vector_store %arg14[%45, %c0_34, %c0_35], %48 {strides = array<i32>} : memref<1x16x1024xbf16, #tpu.memory_space<vmem>>, vector<1x16x1024xbf16>,
    } else {
    }
    %3 = arith.index_cast %arg1 : i32 to index
    %c0 = arith.constant 0 : index
    %c0_1 = arith.constant 0 : index
    %4 = vector.load %arg14[%3, %c0, %c0_1] : memref<1x16x1024xbf16, #tpu.memory_space<vmem>>, vector<1x16x1024xbf16>
    %5 = vector.shape_cast %4 : vector<1x16x1024xbf16> to vector<16x1024xbf16>
    %c0_2 = arith.constant 0 : index
    %c0_3 = arith.constant 0 : index
    %6 = vector.load %arg11[%c0_2, %c0_3] : memref<1024x256xbf16, #tpu.memory_space<vmem>>, vector<1024x256xbf16>
    %cst = arith.constant dense<0.000000e+00> : vector<16x256xf32>
    %7 = tpu.matmul %5, %6, %cst {dimension_numbers = #tpu.dot_dimension_numbers<[1], [0], [0], [1], [0, 0, 1, 1], [], []>} : vector<16x1024xbf16>, vector<1024x256xbf16>, vector<16x256xf32> -> vector<16x256xf32>
    %c0_4 = arith.constant 0 : index
    %c0_5 = arith.constant 0 : index
    %8 = vector.load %arg12[%c0_4, %c0_5] : memref<1x256xf32, #tpu.memory_space<vmem>>, vector<1x256xf32>
    %9 = vector.broadcast %8 : vector<1x256xf32> to vector<16x256xf32>
    %10 = arith.addf %7, %9 : vector<16x256xf32>
    %c0_6 = arith.constant 0 : index
    %c0_7 = arith.constant 0 : index
    %11 = vector.load %arg13[%c0_6, %c0_7] : memref<16x256xf32, #tpu.memory_space<vmem>>, vector<16x256xf32>
    tpu.vector_store %arg13[%c0_6, %c0_7], %10 {strides = array<i32>} : memref<16x256xf32, #tpu.memory_space<vmem>>, vector<16x256xf32>,
    return
  }
  func.func @transform_0(%arg0: i32, %arg1: i32) -> (i32, i32) {
    %c0_i32 = arith.constant 0 : i32
    %c0_i32_0 = arith.constant 0 : i32
    return %arg1, %c0_i32 : i32, i32
  }
  func.func @transform_1(%arg0: i32, %arg1: i32) -> (i32, i32) {
    %c0_i32 = arith.constant 0 : i32
    %c0_i32_0 = arith.constant 0 : i32
    %c0_i32_1 = arith.constant 0 : i32
    return %c0_i32, %c0_i32_0 : i32, i32
  }
  func.func @transform_2(%arg0: i32, %arg1: i32) -> (i32, i32) {
    %c0_i32 = arith.constant 0 : i32
    %c0_i32_0 = arith.constant 0 : i32
    %c0_i32_1 = arith.constant 0 : i32
    return %c0_i32, %c0_i32_0 : i32, i32
  }
  func.func @transform_3(%arg0: i32, %arg1: i32) -> (i32, i32) {
    %c0_i32 = arith.constant 0 : i32
    %c0_i32_0 = arith.constant 0 : i32
    %c0_i32_1 = arith.constant 0 : i32
    return %c0_i32, %c0_i32_0 : i32, i32
  }
  func.func @transform_4(%arg0: i32, %arg1: i32) -> (i32, i32) {
    %c0_i32 = arith.constant 0 : i32
    %c0_i32_0 = arith.constant 0 : i32
    %c0_i32_1 = arith.constant 0 : i32
    return %c0_i32, %c0_i32_0 : i32, i32
  }
  func.func @transform_5(%arg0: i32, %arg1: i32) -> (i32, i32) {
    %c0_i32 = arith.constant 0 : i32
    %c0_i32_0 = arith.constant 0 : i32
    %c0_i32_1 = arith.constant 0 : i32
    return %c0_i32, %c0_i32_0 : i32, i32
  }
  func.func @transform_6(%arg0: i32, %arg1: i32) -> (i32, i32) {
    %c0_i32 = arith.constant 0 : i32
    %c0_i32_0 = arith.constant 0 : i32
    %c0_i32_1 = arith.constant 0 : i32
    return %c0_i32, %c0_i32_0 : i32, i32
  }
  func.func @transform_7(%arg0: i32, %arg1: i32) -> (i32, i32) {
    %c0_i32 = arith.constant 0 : i32
    %c0_i32_0 = arith.constant 0 : i32
    %c0_i32_1 = arith.constant 0 : i32
    return %c0_i32, %c0_i32_0 : i32, i32
  }
  func.func @transform_8(%arg0: i32, %arg1: i32) -> (i32, i32) {
    %c0_i32 = arith.constant 0 : i32
    %c0_i32_0 = arith.constant 0 : i32
    %c0_i32_1 = arith.constant 0 : i32
    return %c0_i32, %c0_i32_0 : i32, i32
  }
  func.func @transform_9(%arg0: i32, %arg1: i32) -> (i32, i32) {
    %c0_i32 = arith.constant 0 : i32
    %c0_i32_0 = arith.constant 0 : i32
    return %c0_i32, %arg0 : i32, i32
  }
  func.func @transform_10(%arg0: i32, %arg1: i32) -> (i32, i32) {
    %c0_i32 = arith.constant 0 : i32
    %c0_i32_0 = arith.constant 0 : i32
    return %c0_i32, %arg0 : i32, i32
  }
  func.func @transform_11(%arg0: i32, %arg1: i32) -> (i32, i32) {
    %c0_i32 = arith.constant 0 : i32
    return %arg1, %arg0 : i32, i32
  }
}

</mosaic_0001>

<bundles_post_ra>
// kernel: tpu_custom_call.1
= control target key start
LH: loop header
LB: loop body
LE: loop exit
PB: predicated region body
PF: predicated region fallthrough
CT: control target
= control target key end

     0   :  { %16 = vsyncpa [#allocation4], 0  ;;  %s4814_s0 = inlined_call_operand.hbm [shape: bf16[16,32], index: 0, kind: input, shape index: {}]   ;;  %s4815_s1 = inlined_call_operand.hbm [shape: bf16[32,64], index: 1, kind: input, shape index: {}]   ;;  %s4816_s2 = inlined_call_operand.hbm [shape: f32[1,64], index: 2, kind: input, shape index: {}]   ;;  %s4817_s3 = inlined_call_operand.hbm [shape: bf16[64,128], index: 3, kind: input, shape index: {}]   ;;  %s4818_s4 = inlined_call_operand.hbm [shape: f32[1,128], index: 4, kind: input, shape index: {}]   ;;  %s4819_s5 = inlined_call_operand.hbm [shape: bf16[128,512], index: 5, kind: input, shape index: {}]   ;;  %s4820_s6 = inlined_call_operand.vmem [shape: f32[1,512], index: 6, kind: input, shape index: {}]   ;;  %s4821_s7 = inlined_call_operand.hbm [shape: bf16[512,1024], index: 7, kind: input, shape index: {}]   ;;  %s4822_s8 = inlined_call_operand.vmem [shape: f32[1,1024], index: 8, kind: input, shape index: {}]   ;;  %s4823_s9 = inlined_call_operand.hbm [shape: bf16[1024,256], index: 9, kind: input, shape index: {}]   ;;  %s4824_s10 = inlined_call_operand.vmem [shape: f32[1,256], index: 10, kind: input, shape index: {}]   ;;  %s4825_s11 = inlined_call_operand.hbm [shape: f32[16,256], index: 11, kind: output, shape index: {}]  }
   0x1   :  { %17 = vsyncpa [#allocation7], 0 }
   0x2   :  { %18 = vsyncpa [#allocation10], 0 }
   0x3   :  { %19 = vsyncpa [#allocation13], 0 }
   0x4   :  { %20 = vsyncpa [#allocation16], 0 }
   0x5   :  { %21 = vsyncpa [#allocation5], 0  ;;  %s4597_s17 = smov [#allocation6]   ;;  %s4598_s19 = smov [#allocation9]  }
   0x6   :  { %s39_s18 = sshll.u32 %s4597_s17, 4  ;;  %s61_s20 = sshll.u32 %s4598_s19, 4  ;;  %s40_s18 = int_to_ptr.vmem [resolvable:$true] %s39_s18  ;;  %s62_s20 = int_to_ptr.vmem [resolvable:$true] %s61_s20 }
   0x7   :  { %s4413_s21 = scalar_lea.vmem %s40_s18, 256  ;;  %p4418_p1 = scmp.lt.s32.totalorder %s40_s18, %s40_s18 }
   0x8   :  { %p4414_p0 = scmp.ne.s32.totalorder %s40_s18, %s4413_s21  ;;  %p4419_p2 = scmp.lt.s32.totalorder %s4413_s21, %s4413_s21 }
   0xa   :  { %p4420_p3 = por %p4419_p2, %p4418_p1 }
   0xc   :  { %p4421_p4 = pnand %p4420_p3, %p4414_p0 }
   0xe   :  { %4424 = shalt.err (!%p4421_p4)
}
   0xf   :  { %s4599_s22 = smov 64   ;;  %s4600_s23 = smov 4  }
  0x10   :  { %45 = dma.hbm_to_vmem [thread:$0]  %s4815_s1, 256, %s40_s18, [#allocation7], %s4599_s22, %s4599_s22, %s4600_s23  }
  0x11   :  { %s4433_s26 = scalar_lea.vmem %s62_s20, 512  ;;  %p4438_p6 = scmp.lt.s32.totalorder %s62_s20, %s62_s20 }
  0x12   :  { %p4434_p5 = scmp.ne.s32.totalorder %s62_s20, %s4433_s26  ;;  %p4439_p7 = scmp.lt.s32.totalorder %s4433_s26, %s4433_s26 }
  0x14   :  { %p4440_p8 = por %p4439_p7, %p4438_p6 }
  0x16   :  { %p4441_p9 = pnand %p4440_p8, %p4434_p5 }
  0x18   :  { %4444 = shalt.err (!%p4441_p9)
}
  0x19   :  { %67 = dma.hbm_to_vmem [thread:$0]  %s4817_s3, 512, %s62_s20, [#allocation10], %s4599_s22, %s4599_s22, %s4600_s23  }
  0x1a   :  { %s4601_s29 = smov [#allocation12]  }
  0x1b   :  { %s83_s30 = sshll.u32 %s4601_s29, 4  ;;  %s84_s30 = int_to_ptr.vmem [resolvable:$true] %s83_s30 }
  0x1c   :  { %s4453_s12 = scalar_lea.vmem %s84_s30, 4096  ;;  %p4458_p11 = scmp.lt.s32.totalorder %s84_s30, %s84_s30 }
  0x1d   :  { %p4454_p10 = scmp.ne.s32.totalorder %s84_s30, %s4453_s12  ;;  %p4459_p12 = scmp.lt.s32.totalorder %s4453_s12, %s4453_s12 }
  0x1f   :  { %p4460_p13 = por %p4459_p12, %p4458_p11 }
  0x21   :  { %p4461_p0 = pnand %p4460_p13, %p4454_p10 }
  0x23   :  { %4464 = shalt.err (!%p4461_p0)
}
  0x24   :  { %s4602_s1 = smov 256   ;;  %s4603_s13 = smov 16  }
  0x25   :  { %89 = dma.hbm_to_vmem [thread:$0]  %s4819_s5, 4096, %s84_s30, [#allocation13], %s4602_s1, %s4602_s1, %s4603_s13  }
  0x26   :  { %s4604_s3 = smov [#allocation3]   ;;  %s4605_s17 = smov [#allocation8]  }
  0x27   :  { %s27_s16 = sshll.u32 %s4604_s3, 4  ;;  %s52_s18 = sshll.u32 %s4605_s17, 4  ;;  %s28_s16 = int_to_ptr.vmem [resolvable:$true] %s27_s16  ;;  %s53_s18 = int_to_ptr.vmem [resolvable:$true] %s52_s18 }
  0x28   :  { %s4473_s19 = scalar_lea.vmem %s28_s16, 128  ;;  %p4478_p2 = scmp.lt.s32.totalorder %s28_s16, %s28_s16 }
  0x29   :  { %p4474_p1 = scmp.ne.s32.totalorder %s28_s16, %s4473_s19  ;;  %p4479_p3 = scmp.lt.s32.totalorder %s4473_s19, %s4473_s19 }
  0x2b   :  { %p4480_p4 = por %p4479_p3, %p4478_p2 }
  0x2d   :  { %p4481_p5 = pnand %p4480_p4, %p4474_p1 }
  0x2f   :  { %4484 = shalt.err (!%p4481_p5)
}
  0x30   :  { %33 = dma.hbm_to_vmem [thread:$0]  %s4814_s0, 128, %s28_s16, [#allocation4], %s4599_s22, %s4599_s22, %s4600_s23  }
  0x31   :  { %s4493_s5 = scalar_lea.vmem %s53_s18, 16  ;;  %s4497_s24 = scalar_lea.vmem %s53_s18, 32 }
  0x32   :  { %p4494_p6 = scmp.ne.s32.totalorder %s53_s18, %s4493_s5  ;;  %p4498_p7 = scmp.lt.s32.totalorder %s53_s18, %s53_s18 }
  0x33   :  { %p4499_p8 = scmp.lt.s32.totalorder %s4497_s24, %s4493_s5 }
  0x35   :  { %p4500_p9 = por %p4499_p8, %p4498_p7 }
  0x37   :  { %p4501_p10 = pnand %p4500_p9, %p4494_p6 }
  0x39   :  { %4504 = shalt.err (!%p4501_p10)
}
  0x3a   :  { %55 = dma.hbm_to_vmem [thread:$0]  %s4816_s2, 16, %s53_s18, [#allocation7]  }
  0x3b   :  { %s4606_s27 = smov [#allocation11]   ;;  %s4607_s29 = smov [#allocation14]  }
  0x3c   :  { %s74_s28 = sshll.u32 %s4606_s27, 4  ;;  %s97_s30 = sshll.u32 %s4607_s29, 4  ;;  %s75_s28 = int_to_ptr.vmem [resolvable:$true] %s74_s28  ;;  %s98_s30 = int_to_ptr.vmem [resolvable:$true] %s97_s30 }
  0x3d   :  { %s4513_s12 = scalar_lea.vmem %s75_s28, 16  ;;  %s4517_s0 = scalar_lea.vmem %s75_s28, 32 }
  0x3e   :  { %p4514_p11 = scmp.ne.s32.totalorder %s75_s28, %s4513_s12  ;;  %p4518_p12 = scmp.lt.s32.totalorder %s75_s28, %s75_s28 }
  0x3f   :  { %p4519_p13 = scmp.lt.s32.totalorder %s4517_s0, %s4513_s12 }
  0x41   :  { %p4520_p0 = por %p4519_p13, %p4518_p12 }
  0x43   :  { %p4521_p1 = pnand %p4520_p0, %p4514_p11 }
  0x45   :  { %4524 = shalt.err (!%p4521_p1)
}
  0x46   :  { %77 = dma.hbm_to_vmem [thread:$0]  %s4818_s4, 16, %s75_s28, [#allocation10]  }
  0x47   :  { %s4533_s14 = scalar_lea.vmem %s98_s30, 32768  ;;  %p4538_p3 = scmp.lt.s32.totalorder %s98_s30, %s98_s30 }
  0x48   :  { %p4534_p2 = scmp.ne.s32.totalorder %s98_s30, %s4533_s14  ;;  %p4539_p4 = scmp.lt.s32.totalorder %s4533_s14, %s4533_s14 }
  0x4a   :  { %p4540_p5 = por %p4539_p4, %p4538_p3 }
  0x4c   :  { %p4541_p6 = pnand %p4540_p5, %p4534_p2 }
  0x4e   :  { %4544 = shalt.err (!%p4541_p6)
}
  0x4f   :  { %s4608_s2 = smov 512   ;;  %s4609_s15 = smov 32  }
  0x50   :  { %103 = dma.hbm_to_vmem [thread:$0]  %s4821_s7, 32768, %s98_s30, [#allocation13], %s4608_s2, %s4608_s2, %s4609_s15  }
  0x51   :  { %s4610_s17 = smov [#allocation15]  }
  0x52   :  { %s111_s18 = sshll.u32 %s4610_s17, 4  ;;  %s112_s18 = int_to_ptr.vmem [resolvable:$true] %s111_s18 }
  0x53   :  { %s4553_s19 = scalar_lea.vmem %s112_s18, 16384  ;;  %p4558_p8 = scmp.lt.s32.totalorder %s112_s18, %s112_s18 }
  0x54   :  { %p4554_p7 = scmp.ne.s32.totalorder %s112_s18, %s4553_s19  ;;  %p4559_p9 = scmp.lt.s32.totalorder %s4553_s19, %s4553_s19 }
  0x56   :  { %p4560_p10 = por %p4559_p9, %p4558_p8 }
  0x58   :  { %p4561_p11 = pnand %p4560_p10, %p4554_p7 }
  0x5a   :  { %4564 = shalt.err (!%p4561_p11)
}
  0x5b   :  { %s4611_s4 = smov 128   ;;  %s4612_s20 = smov 8  }
  0x5c   :  { %117 = dma.hbm_to_vmem [thread:$0]  %s4823_s9, 16384, %s112_s18, [#allocation16], %s4611_s4, %s4611_s4, %s4612_s20  }
  0x5d   :  { %4585 = dma.done.wait [#allocation4], 128  }
  0x5e   :  { %4586 = vsyncadd [#allocation4], 4294967168 }
  0x5f   :  { %4587 = dma.done.wait [#allocation7], 272  }
  0x60   :  { %4588 = vsyncadd [#allocation7], 4294967024 }
  0x61   :  { %4589 = dma.done.wait [#allocation10], 528  }
  0x62   :  { %4590 = vsyncadd [#allocation10], 4294966768 }
  0x63   :  { %4591 = dma.done.wait [#allocation13], 36864  }
  0x64   :  { %4592 = vsyncadd [#allocation13], 4294930432 }
  0x65   :  { %4593 = dma.done.wait [#allocation16], 16384  }
  0x66   :  { %4594 = vsyncadd [#allocation16], 4294950912  ;;  %v4613_v0 = vmov 0.0   ;;  %vm4614_vm0 = vmmov 0   ;;  %v4158_v1 = vld [vmem:[#allocation6 + $0x8] sm:$0xff]   ;;  %v4159_v2 = vld [vmem:[#allocation6] sm:$0xff]  }
  0x67   :  { %4118 = vmatprep.subr.bf16.mxu0 %v4613_v0  ;;  %4122 = vmatprep.mubr.msk.bf16.mxu0 %vm4614_vm0, %v4613_v0  ;;  %v4161_v3 = vld [vmem:[#allocation9 + $0x18] sm:$0xff]   ;;  %v4160_v4 = vld [vmem:[#allocation3] sm:$0xff]   ;;  %vm179_vm1 = vcmask 261120   ;;  %v4162_v5 = vld [vmem:[#allocation9 + $0x10] sm:$0xff]   ;;  %vm266_vm2 = vcmask 523264   ;;  %v4615_v50 = vmov 0  }
  0x68   :  { %4126 = vmatprep.subr.bf16.mxu1 %v4613_v0  ;;  %4134 = vmatprep.mubr.msk.bf16.mxu1 %vm4614_vm0, %v4613_v0  ;;  %v4163_v6 = vld [vmem:[#allocation9 + $0x8] sm:$0xff]   ;;  %v4164_v7 = vld [vmem:[#allocation9] sm:$0xff]   ;;  %v3651_v21 = vld [vmem:[#allocation8] ss:$0 sm:$0xff] }
  0x69   :  { %4119 = vmatpush3.bf16.msra.mxu0 %v4158_v1  ;;  %4127 = vmatpush3.bf16.msra.mxu1 %v4161_v3  ;;  %v4165_v8 = vld [vmem:[#allocation12 + $0xe0] ss:$16 sps:$4 sm:$0xff]   ;;  %v4167_v9 = vld [vmem:[#allocation12 + $0xe4] ss:$16 sps:$4 sm:$0xff]   ;;  %v4170_v10 = vld [vmem:[#allocation12 + $0xec] ss:$16 sps:$4 sm:$0xff]  }
  0x6a   :  { %4120 = vmatprep.subr.bf16.mxu0 %v4613_v0  ;;  %4128 = vmatprep.subr.bf16.mxu1 %v4613_v0  ;;  %v4173_v11 = vld [vmem:[#allocation12 + $0xc4] ss:$16 sps:$4 sm:$0xff]   ;;  %v4171_v12 = vld [vmem:[#allocation12 + $0xc0] ss:$16 sps:$4 sm:$0xff]   ;;  %v4168_v30 = vld [vmem:[#allocation12 + $0xe8] ss:$16 sps:$4 sm:$0xff]  }
  0x6b   :  { %v4179_v13 = vld [vmem:[#allocation12 + $0xa4] ss:$16 sps:$4 sm:$0xff]   ;;  %v4177_v14 = vld [vmem:[#allocation12 + $0xa0] ss:$16 sps:$4 sm:$0xff]   ;;  %v4176_v32 = vld [vmem:[#allocation12 + $0xcc] ss:$16 sps:$4 sm:$0xff]  }
  0x6c   :  { %v4185_v15 = vld [vmem:[#allocation12 + $0x84] ss:$16 sps:$4 sm:$0xff]   ;;  %v4183_v16 = vld [vmem:[#allocation12 + $0x80] ss:$16 sps:$4 sm:$0xff]   ;;  %v4174_v33 = vld [vmem:[#allocation12 + $0xc8] ss:$16 sps:$4 sm:$0xff]  }
  0x6d   :  { %4121 = vmatpush3.bf16.msra.mxu0 %v4159_v2  ;;  %4129 = vmatpush3.bf16.msra.mxu1 %v4162_v5  ;;  %v4191_v17 = vld [vmem:[#allocation12 + $0x64] ss:$16 sps:$4 sm:$0xff]   ;;  %v4189_v18 = vld [vmem:[#allocation12 + $0x60] ss:$16 sps:$4 sm:$0xff]   ;;  %v4182_v34 = vld [vmem:[#allocation12 + $0xac] ss:$16 sps:$4 sm:$0xff]  }
  0x6e   :  { %4130 = vmatprep.subr.bf16.mxu1 %v4613_v0  ;;  %528 = vmatprep.subr.bf16.mxu0 %v4167_v9  ;;  %v4197_v19 = vld [vmem:[#allocation12 + $0x44] ss:$16 sps:$4 sm:$0xff]   ;;  %v4195_v20 = vld [vmem:[#allocation12 + $0x40] ss:$16 sps:$4 sm:$0xff]   ;;  %v4180_v35 = vld [vmem:[#allocation12 + $0xa8] ss:$16 sps:$4 sm:$0xff]  }
  0x6f   :  { %v4188_v36 = vld [vmem:[#allocation12 + $0x8c] ss:$16 sps:$4 sm:$0xff]   ;;  %v4186_v37 = vld [vmem:[#allocation12 + $0x88] ss:$16 sps:$4 sm:$0xff]   ;;  %v4203_v42 = vld [vmem:[#allocation12 + $0x24] ss:$16 sps:$4 sm:$0xff]  }
  0x70   :  { %4123 = vmatmul.mubr.msk.bf16.vlgmr.msra.gmra.mxu0 %vm179_vm1, %v4160_v4  ;;  %v4194_v38 = vld [vmem:[#allocation12 + $0x6c] ss:$16 sps:$4 sm:$0xff]   ;;  %v4192_v39 = vld [vmem:[#allocation12 + $0x68] ss:$16 sps:$4 sm:$0xff]   ;;  %v4201_v44 = vld [vmem:[#allocation12 + $0x20] ss:$16 sps:$4 sm:$0xff]  }
  0x71   :  { %4131 = vmatpush3.bf16.msra.mxu1 %v4163_v6  ;;  %529 = vmatpush1.bf16.msra.mxu0 %v4165_v8  ;;  %v4200_v40 = vld [vmem:[#allocation12 + $0x4c] ss:$16 sps:$4 sm:$0xff]   ;;  %v4198_v41 = vld [vmem:[#allocation12 + $0x48] ss:$16 sps:$4 sm:$0xff]   ;;  %v4209_v46 = vld [vmem:[#allocation12 + $0x4] ss:$16 sps:$4 sm:$0xff]  }
  0x72   :  { %4132 = vmatprep.subr.bf16.mxu1 %v4613_v0  ;;  %530 = vmatprep.subr.bf16.mxu0 %v4173_v11  ;;  %v4206_v43 = vld [vmem:[#allocation12 + $0x2c] ss:$16 sps:$4 sm:$0xff]   ;;  %v4204_v45 = vld [vmem:[#allocation12 + $0x28] ss:$16 sps:$4 sm:$0xff]   ;;  %v4207_v48 = vld [vmem:[#allocation12] ss:$16 sps:$4 sm:$0xff]  }
  0x73   :  { %v4212_v47 = vld [vmem:[#allocation12 + $0xc] ss:$16 sps:$4 sm:$0xff]   ;;  %v4210_v49 = vld [vmem:[#allocation12 + $0x8] ss:$16 sps:$4 sm:$0xff]   ;;  %560 = vmatprep.mubr.bf16.mxu0 %v4615_v50  ;;  %v682_v51 = vld [vmem:[#allocation14 + $0x1c0] sm:$0xff] }
  0x74   :  { %v686_v52 = vld [vmem:[#allocation14 + $0x1e0] sm:$0xff]  ;;  %v3656_v59 = vld [vmem:[#allocation11] ss:$0 sm:$0xff] }
  0x75   :  { %4133 = vmatpush3.bf16.msra.mxu1 %v4164_v7  ;;  %531 = vmatpush1.bf16.msra.mxu0 %v4171_v12  ;;  %v810_v53 = vld [vmem:[#allocation14 + $0x5c0] sm:$0xff]  ;;  %v3750_v54 = vcombine.low %v682_v51, %v686_v52  ;;  %v3751_v55 = vcombine.high %v682_v51, %v686_v52 }
  0x76   :  { %571 = vmatprep.subr.bf16.mxu1 %v4170_v10  ;;  %532 = vmatprep.subr.bf16.mxu0 %v4179_v13  ;;  %v814_v56 = vld [vmem:[#allocation14 + $0x5e0] sm:$0xff] }
  0x77   :  { %v3878_v57 = vcombine.low %v810_v53, %v814_v56  ;;  %v3879_v58 = vcombine.high %v810_v53, %v814_v56  ;;  %v674_v1 = vld [vmem:[#allocation14 + $0x180] sm:$0xff] }
  0x78   :  { %v678_v3 = vld [vmem:[#allocation14 + $0x1a0] sm:$0xff] }
  0x79   :  { %533 = vmatpush1.bf16.msra.mxu0 %v4177_v14  ;;  %v802_v4 = vld [vmem:[#allocation14 + $0x580] sm:$0xff]  ;;  %v3743_v9 = vcombine.high %v674_v1, %v678_v3 }
  0x7a   :  { %534 = vmatprep.subr.bf16.mxu0 %v4185_v15  ;;  %v806_v5 = vld [vmem:[#allocation14 + $0x5a0] sm:$0xff]  ;;  %v3742_v15 = vcombine.low %v674_v1, %v678_v3 }
  0x7b   :  { %v3871_v10 = vcombine.high %v802_v4, %v806_v5  ;;  %v666_v11 = vld [vmem:[#allocation14 + $0x140] sm:$0xff] }
  0x7c   :  { %v670_v12 = vld [vmem:[#allocation14 + $0x160] sm:$0xff] }
  0x7d   :  { %535 = vmatpush1.bf16.msra.mxu0 %v4183_v16  ;;  %v794_v13 = vld [vmem:[#allocation14 + $0x540] sm:$0xff]  ;;  %v3870_v16 = vcombine.low %v802_v4, %v806_v5 }
  0x7e   :  { %536 = vmatprep.subr.bf16.mxu0 %v4191_v17  ;;  %v798_v14 = vld [vmem:[#allocation14 + $0x560] sm:$0xff]  ;;  %v3735_v17 = vcombine.high %v666_v11, %v670_v12 }
  0x7f   :  { %v626_v51 = vld [vmem:[#allocation14] sm:$0xff] }
  0x80   :  { %v630_v52 = vld [vmem:[#allocation14 + $0x20] sm:$0xff] }
  0x81   :  { %537 = vmatpush1.bf16.msra.mxu0 %v4189_v18  ;;  %v3863_v18 = vcombine.high %v794_v13, %v798_v14  ;;  %v754_v53 = vld [vmem:[#allocation14 + $0x400] sm:$0xff] }
  0x82   :  { %538 = vmatprep.subr.bf16.mxu0 %v4197_v19  ;;  %v658_v19 = vld [vmem:[#allocation14 + $0x100] sm:$0xff] }
  0x83   :  { %v738_v3 = vld [vmem:[#allocation14 + $0x380] sm:$0xff] }
  0x84   :  { %v742_v4 = vld [vmem:[#allocation14 + $0x3a0] sm:$0xff] }
  0x85   :  { %539 = vmatpush1.bf16.msra.mxu0 %v4195_v20  ;;  %v662_v20 = vld [vmem:[#allocation14 + $0x120] sm:$0xff] }
  0x86   :  { %540 = vmatprep.subr.bf16.mxu0 %v4203_v42  ;;  %v866_v5 = vld [vmem:[#allocation14 + $0x780] sm:$0xff] }
  0x89   :  { %541 = vmatpush1.bf16.msra.mxu0 %v4201_v44  ;;  %v638_v44 = vld [vmem:[#allocation14 + $0x60] sm:$0xff] }
  0x8a   :  { %542 = vmatprep.subr.bf16.mxu0 %v4209_v46  ;;  %v766_v46 = vld [vmem:[#allocation14 + $0x460] sm:$0xff] }
  0x8d   :  { %543 = vmatpush1.bf16.msra.mxu0 %v4207_v48 }
  0x8e   :  { %2204 = vmatprep.subr.bf16.mxu0 %v3751_v55 }
 0x130   :  { %v217_v22 = vpop.f32.mrf.mxu0 }
 0x131   :  { %v218_v24 = vadd.f32 %v3651_v21, %v217_v22  ;;  %v790_v22 = vld [vmem:[#allocation14 + $0x520] sm:$0xff] }
 0x132   :  { %v4124_v23 = vpop.f32.mrf.mxu0 }
 0x133   :  { %v224_v28 = vmax.f32 %v218_v24, 0.0  ;;  %v3734_v23 = vcombine.low %v666_v11, %v670_v12  ;;  %v3862_v24 = vcombine.low %v794_v13, %v798_v14  ;;  %v730_v11 = vld [vmem:[#allocation14 + $0x340] sm:$0xff] }
 0x134   :  { %v220_v25 = vpop.f32.mrf.mxu0  ;;  %v734_v12 = vld [vmem:[#allocation14 + $0x360] sm:$0xff] }
 0x135   :  { %v221_v26 = vadd.f32 %v3651_v21, %v220_v25  ;;  %v786_v21 = vld [vmem:[#allocation14 + $0x500] sm:$0xff]  ;;  %v3727_v25 = vcombine.high %v658_v19, %v662_v20 }
 0x136   :  { %v4125_v27 = vpop.f32.mrf.mxu0  ;;  %v858_v13 = vld [vmem:[#allocation14 + $0x740] sm:$0xff] }
 0x137   :  { %v225_v29 = vmax.f32 %v221_v26, 0.0  ;;  %v3855_v26 = vcombine.high %v786_v21, %v790_v22  ;;  %v650_v27 = vld [vmem:[#allocation14 + $0xc0] sm:$0xff] }
 0x138   :  { %v862_v14 = vld [vmem:[#allocation14 + $0x760] sm:$0xff] }
 0x139   :  { %v226_v31 = vpack.c.bf16 %v225_v29, %v224_v28  ;;  %v654_v28 = vld [vmem:[#allocation14 + $0xe0] sm:$0xff] }
 0x13a   :  { %v778_v29 = vld [vmem:[#allocation14 + $0x4c0] sm:$0xff] }
 0x13b   :  { %4135 = vmatmul.mubr.msk.bf16.vlgmr.msra.gmra.mxu1 %vm266_vm2, %v226_v31  ;;  %v3726_v31 = vcombine.low %v658_v19, %v662_v20  ;;  %v722_v19 = vld [vmem:[#allocation14 + $0x300] sm:$0xff] }
 0x13c   :  { %572 = vmatpush1.bf16.msra.mxu1 %v4168_v30  ;;  %603 = vmatprep.mubr.bf16.mxu1 %v4615_v50  ;;  %v782_v30 = vld [vmem:[#allocation14 + $0x4e0] sm:$0xff] }
 0x13d   :  { %573 = vmatprep.subr.bf16.mxu1 %v4176_v32  ;;  %v3854_v32 = vcombine.low %v786_v21, %v790_v22  ;;  %v726_v20 = vld [vmem:[#allocation14 + $0x320] sm:$0xff] }
 0x13e   :  { %v850_v21 = vld [vmem:[#allocation14 + $0x700] sm:$0xff] }
 0x13f   :  { %v854_v22 = vld [vmem:[#allocation14 + $0x720] sm:$0xff] }
 0x140   :  { %574 = vmatpush1.bf16.msra.mxu1 %v4174_v33  ;;  %v3719_v33 = vcombine.high %v650_v27, %v654_v28 }
 0x141   :  { %575 = vmatprep.subr.bf16.mxu1 %v4182_v34  ;;  %v3847_v34 = vcombine.high %v778_v29, %v782_v30 }
 0x144   :  { %576 = vmatpush1.bf16.msra.mxu1 %v4180_v35  ;;  %v642_v35 = vld [vmem:[#allocation14 + $0x80] sm:$0xff] }
 0x145   :  { %577 = vmatprep.subr.bf16.mxu1 %v4188_v36  ;;  %v646_v36 = vld [vmem:[#allocation14 + $0xa0] sm:$0xff] }
 0x148   :  { %578 = vmatpush1.bf16.msra.mxu1 %v4186_v37  ;;  %v770_v37 = vld [vmem:[#allocation14 + $0x480] sm:$0xff] }
 0x149   :  { %579 = vmatprep.subr.bf16.mxu1 %v4194_v38  ;;  %v774_v38 = vld [vmem:[#allocation14 + $0x4a0] sm:$0xff] }
 0x14a   :  { %v3839_v42 = vcombine.high %v770_v37, %v774_v38  ;;  %v3838_v48 = vcombine.low %v770_v37, %v774_v38  ;;  %v706_v37 = vld [vmem:[#allocation14 + $0x280] sm:$0xff] }
 0x14b   :  { %v710_v38 = vld [vmem:[#allocation14 + $0x2a0] sm:$0xff] }
 0x14c   :  { %580 = vmatpush1.bf16.msra.mxu1 %v4192_v39  ;;  %v3718_v39 = vcombine.low %v650_v27, %v654_v28  ;;  %v714_v27 = vld [vmem:[#allocation14 + $0x2c0] sm:$0xff] }
 0x14d   :  { %581 = vmatprep.subr.bf16.mxu1 %v4200_v40  ;;  %v3846_v40 = vcombine.low %v778_v29, %v782_v30  ;;  %v718_v28 = vld [vmem:[#allocation14 + $0x2e0] sm:$0xff] }
 0x14e   :  { %v842_v29 = vld [vmem:[#allocation14 + $0x6c0] sm:$0xff] }
 0x14f   :  { %v846_v30 = vld [vmem:[#allocation14 + $0x6e0] sm:$0xff] }
 0x150   :  { %582 = vmatpush1.bf16.msra.mxu1 %v4198_v41  ;;  %v3711_v41 = vcombine.high %v642_v35, %v646_v36 }
 0x151   :  { %583 = vmatprep.subr.bf16.mxu1 %v4206_v43  ;;  %v634_v43 = vld [vmem:[#allocation14 + $0x40] sm:$0xff] }
 0x152   :  { %v3702_v55 = vcombine.low %v634_v43, %v638_v44 }
 0x154   :  { %584 = vmatpush1.bf16.msra.mxu1 %v4204_v45  ;;  %v762_v45 = vld [vmem:[#allocation14 + $0x440] sm:$0xff] }
 0x155   :  { %585 = vmatprep.subr.bf16.mxu1 %v4212_v47  ;;  %v3710_v47 = vcombine.low %v642_v35, %v646_v36  ;;  %v3831_v50 = vcombine.high %v762_v45, %v766_v46  ;;  %v3830_v56 = vcombine.low %v762_v45, %v766_v46  ;;  %v3782_v35 = vcombine.low %v714_v27, %v718_v28  ;;  %v698_v45 = vld [vmem:[#allocation14 + $0x240] sm:$0xff] }
 0x156   :  { %v3910_v36 = vcombine.low %v842_v29, %v846_v30  ;;  %v702_v46 = vld [vmem:[#allocation14 + $0x260] sm:$0xff] }
 0x158   :  { %586 = vmatpush1.bf16.msra.mxu1 %v4210_v49  ;;  %v3703_v49 = vcombine.high %v634_v43, %v638_v44 }
 0x159   :  { %2247 = vmatprep.subr.bf16.mxu1 %v3879_v58 }
 0x1fb   :  { %v304_v60 = vpop.f32.mrf.mxu1 }
 0x1fc   :  { %v305_v62 = vadd.f32 %v3656_v59, %v304_v60  ;;  %v750_v60 = vld [vmem:[#allocation14 + $0x3e0] sm:$0xff] }
 0x1fd   :  { %v4136_v61 = vpop.f32.mrf.mxu1 }
 0x1fe   :  { %v311_v6 = vmax.f32 %v305_v62, 0.0  ;;  %v874_v61 = vld [vmem:[#allocation14 + $0x7c0] sm:$0xff] }
 0x1ff   :  { %v307_v63 = vpop.f32.mrf.mxu1  ;;  %v878_v62 = vld [vmem:[#allocation14 + $0x7e0] sm:$0xff] }
 0x200   :  { %v308_v0 = vadd.f32 %v3656_v59, %v307_v63  ;;  %v746_v59 = vld [vmem:[#allocation14 + $0x3c0] sm:$0xff]  ;;  %v3694_v63 = vcombine.low %v626_v51, %v630_v52 }
 0x201   :  { %v4137_v2 = vpop.f32.mrf.mxu1  ;;  %v3815_v1 = vcombine.high %v746_v59, %v750_v60 }
 0x202   :  { %v312_v7 = vmax.f32 %v308_v0, 0.0  ;;  %v3943_v2 = vcombine.high %v874_v61, %v878_v62 }
 0x204   :  { %v313_v8 = vpack.c.bf16 %v312_v7, %v311_v6  ;;  %v870_v6 = vld [vmem:[#allocation14 + $0x7a0] sm:$0xff]  ;;  %v3814_v7 = vcombine.low %v746_v59, %v750_v60 }
 0x206   :  { %561 = vmatmul.mubr.bf16.vlgmr.msra.gmra.mxu0 %v313_v8  ;;  %604 = vmatmul.mubr.bf16.vlgmr.msra.gmra.mxu1 %v313_v8  ;;  %v3942_v8 = vcombine.low %v874_v61, %v878_v62  ;;  %v4713_v61 = vld [vmem:[#allocation14 + $0x1c8] sm:$0xff] }
 0x207   :  { %2205 = vmatpush1.bf16.msra.mxu0 %v3750_v54  ;;  %2248 = vmatpush1.bf16.msra.mxu1 %v3878_v57  ;;  %v758_v54 = vld [vmem:[#allocation14 + $0x420] sm:$0xff]  ;;  %v3695_v57 = vcombine.high %v626_v51, %v630_v52  ;;  %v4715_v62 = vld [vmem:[#allocation14 + $0x1e8] sm:$0xff] }
 0x208   :  { %2206 = vmatprep.subr.bf16.mxu0 %v3743_v9  ;;  %2249 = vmatprep.subr.bf16.mxu1 %v3871_v10  ;;  %v3823_v58 = vcombine.high %v754_v53, %v758_v54  ;;  %v3822_v0 = vcombine.low %v754_v53, %v758_v54  ;;  %v3807_v9 = vcombine.high %v738_v3, %v742_v4  ;;  %v690_v53 = vld [vmem:[#allocation14 + $0x200] sm:$0xff] }
 0x209   :  { %v3935_v10 = vcombine.high %v866_v5, %v870_v6  ;;  %v694_v54 = vld [vmem:[#allocation14 + $0x220] sm:$0xff] }
 0x20b   :  { %2207 = vmatpush1.bf16.msra.mxu0 %v3742_v15  ;;  %2250 = vmatpush1.bf16.msra.mxu1 %v3870_v16  ;;  %v3806_v15 = vcombine.low %v738_v3, %v742_v4  ;;  %v3934_v16 = vcombine.low %v866_v5, %v870_v6  ;;  %v348_v5 = vlaneseq }
 0x20c   :  { %2208 = vmatprep.subr.bf16.mxu0 %v3735_v17  ;;  %2251 = vmatprep.subr.bf16.mxu1 %v3863_v18  ;;  %v3799_v17 = vcombine.high %v730_v11, %v734_v12  ;;  %v3927_v18 = vcombine.high %v858_v13, %v862_v14 }
 0x20d   :  { %v4725_v6 = vshrl.u32 %v348_v5, 7  ;;  %v783_v5 = vld [vmem:[#allocation14 + $0x4e8] sm:$0xff] }
 0x20f   :  { %2209 = vmatpush1.bf16.msra.mxu0 %v3734_v23  ;;  %2252 = vmatpush1.bf16.msra.mxu1 %v3862_v24  ;;  %v3798_v23 = vcombine.low %v730_v11, %v734_v12  ;;  %v3926_v24 = vcombine.low %v858_v13, %v862_v14  ;;  %v346_v11 = vld [vmem:[%s4820_s6] sm:$0xf] }
 0x210   :  { %2210 = vmatprep.subr.bf16.mxu0 %v3727_v25  ;;  %2253 = vmatprep.subr.bf16.mxu1 %v3855_v26  ;;  %v3791_v25 = vcombine.high %v722_v19, %v726_v20  ;;  %v3919_v26 = vcombine.high %v850_v21, %v854_v22 }
 0x213   :  { %2211 = vmatpush1.bf16.msra.mxu0 %v3726_v31  ;;  %2254 = vmatpush1.bf16.msra.mxu1 %v3854_v32  ;;  %v3790_v31 = vcombine.low %v722_v19, %v726_v20  ;;  %v3918_v32 = vcombine.low %v850_v21, %v854_v22 }
 0x214   :  { %2212 = vmatprep.subr.bf16.mxu0 %v3719_v33  ;;  %2255 = vmatprep.subr.bf16.mxu1 %v3847_v34  ;;  %v3783_v33 = vcombine.high %v714_v27, %v718_v28  ;;  %v3911_v34 = vcombine.high %v842_v29, %v846_v30 }
 0x217   :  { %2213 = vmatpush1.bf16.msra.mxu0 %v3718_v39  ;;  %2256 = vmatpush1.bf16.msra.mxu1 %v3846_v40  ;;  %v834_v39 = vld [vmem:[#allocation14 + $0x680] sm:$0xff]  ;;  %v3775_v40 = vcombine.high %v706_v37, %v710_v38 }
 0x218   :  { %2214 = vmatprep.subr.bf16.mxu0 %v3711_v41  ;;  %2257 = vmatprep.subr.bf16.mxu1 %v3839_v42  ;;  %v838_v41 = vld [vmem:[#allocation14 + $0x6a0] sm:$0xff]  ;;  %v3774_v42 = vcombine.low %v706_v37, %v710_v38  ;;  %v675_v38 = vld [vmem:[#allocation14 + $0x188] sm:$0xff] }
 0x219   :  { %v3902_v43 = vcombine.low %v834_v39, %v838_v41  ;;  %v3903_v44 = vcombine.high %v834_v39, %v838_v41  ;;  %v679_v41 = vld [vmem:[#allocation14 + $0x1a8] sm:$0xff] }
 0x21b   :  { %2215 = vmatpush1.bf16.msra.mxu0 %v3710_v47  ;;  %2258 = vmatpush1.bf16.msra.mxu1 %v3838_v48  ;;  %v826_v47 = vld [vmem:[#allocation14 + $0x640] sm:$0xff]  ;;  %v3767_v48 = vcombine.high %v698_v45, %v702_v46 }
 0x21c   :  { %2216 = vmatprep.subr.bf16.mxu0 %v3703_v49  ;;  %2259 = vmatprep.subr.bf16.mxu1 %v3831_v50  ;;  %v830_v49 = vld [vmem:[#allocation14 + $0x660] sm:$0xff]  ;;  %v3766_v50 = vcombine.low %v698_v45, %v702_v46 }
 0x21d   :  { %v3894_v51 = vcombine.low %v826_v47, %v830_v49  ;;  %v3895_v52 = vcombine.high %v826_v47, %v830_v49  ;;  %v3745_v49 = vcombine.high %v675_v38, %v679_v41 }
 0x21f   :  { %2217 = vmatpush1.bf16.msra.mxu0 %v3702_v55  ;;  %2260 = vmatpush1.bf16.msra.mxu1 %v3830_v56  ;;  %v818_v55 = vld [vmem:[#allocation14 + $0x600] sm:$0xff]  ;;  %v3759_v56 = vcombine.high %v690_v53, %v694_v54 }
 0x220   :  { %2218 = vmatprep.subr.bf16.mxu0 %v3695_v57  ;;  %2261 = vmatprep.subr.bf16.mxu1 %v3823_v58  ;;  %v822_v57 = vld [vmem:[#allocation14 + $0x620] sm:$0xff]  ;;  %v3758_v58 = vcombine.low %v690_v53, %v694_v54  ;;  %v799_v53 = vld [vmem:[#allocation14 + $0x568] sm:$0xff]  ;;  %v3744_v54 = vcombine.low %v675_v38, %v679_v41 }
 0x221   :  { %v3886_v59 = vcombine.low %v818_v55, %v822_v57  ;;  %v3887_v60 = vcombine.high %v818_v55, %v822_v57  ;;  %v875_v41 = vld [vmem:[#allocation14 + $0x7c8] sm:$0xff] }
 0x223   :  { %2219 = vmatpush1.bf16.msra.mxu0 %v3694_v63  ;;  %2262 = vmatpush1.bf16.msra.mxu1 %v3822_v0  ;;  %v4717_v63 = vld [vmem:[#allocation14 + $0x5c8] sm:$0xff]  ;;  %v3753_v0 = vcombine.high %v4713_v61, %v4715_v62 }
 0x224   :  { %2220 = vmatprep.subr.bf16.mxu0 %v3815_v1  ;;  %2263 = vmatprep.subr.bf16.mxu1 %v3943_v2  ;;  %v815_v1 = vld [vmem:[#allocation14 + $0x5e8] sm:$0xff]  ;;  %v3752_v2 = vcombine.low %v4713_v61, %v4715_v62 }
 0x225   :  { %v3880_v3 = vcombine.low %v4717_v63, %v815_v1  ;;  %v3881_v4 = vcombine.high %v4717_v63, %v815_v1  ;;  %v791_v61 = vld [vmem:[#allocation14 + $0x528] sm:$0xff] }
 0x227   :  { %2221 = vmatpush2.bf16.msra.mxu0 %v3814_v7  ;;  %2264 = vmatpush2.bf16.msra.mxu1 %v3942_v8  ;;  %v4728_v7 = vsub.s32 1, %v4725_v6  ;;  %v362_v8 = vsub.s32 3, %v4725_v6 }
 0x228   :  { %2222 = vmatprep.subr.bf16.mxu0 %v3807_v9  ;;  %2265 = vmatprep.subr.bf16.mxu1 %v3935_v10  ;;  %v4732_v9 = vsub.s32 0, %v4725_v6  ;;  %v358_v10 = vsub.s32 2, %v4725_v6 }
 0x229   :  { %v355_v14 = vrot.slane %v346_v11, %v4728_v7 }
 0x22b   :  { %2223 = vmatpush2.bf16.msra.mxu0 %v3806_v15  ;;  %2266 = vmatpush2.bf16.msra.mxu1 %v3934_v16  ;;  %v363_v15 = vrot.slane %v346_v11, %v362_v8  ;;  %v351_v16 = vrot.slane %v346_v11, %v4732_v9 }
 0x22c   :  { %2224 = vmatprep.subr.bf16.mxu0 %v3799_v17  ;;  %2267 = vmatprep.subr.bf16.mxu1 %v3927_v18  ;;  %v359_v17 = vrot.slane %v346_v11, %v358_v10 }
 0x22f   :  { %2225 = vmatpush2.bf16.msra.mxu0 %v3798_v23  ;;  %2268 = vmatpush2.bf16.msra.mxu1 %v3926_v24 }
 0x230   :  { %2226 = vmatprep.subr.bf16.mxu0 %v3791_v25  ;;  %2269 = vmatprep.subr.bf16.mxu1 %v3919_v26 }
 0x233   :  { %2227 = vmatpush2.bf16.msra.mxu0 %v3790_v31  ;;  %2270 = vmatpush2.bf16.msra.mxu1 %v3918_v32 }
 0x234   :  { %2228 = vmatprep.subr.bf16.mxu0 %v3783_v33  ;;  %2271 = vmatprep.subr.bf16.mxu1 %v3911_v34 }
 0x237   :  { %2229 = vmatpush2.bf16.msra.mxu0 %v3782_v35  ;;  %2272 = vmatpush2.bf16.msra.mxu1 %v3910_v36 }
 0x238   :  { %2230 = vmatprep.subr.bf16.mxu0 %v3775_v40  ;;  %2273 = vmatprep.subr.bf16.mxu1 %v3903_v44 }
 0x23b   :  { %2231 = vmatpush2.bf16.msra.mxu0 %v3774_v42  ;;  %2274 = vmatpush2.bf16.msra.mxu1 %v3902_v43  ;;  %v803_v42 = vld [vmem:[#allocation14 + $0x588] sm:$0xff] }
 0x23c   :  { %2232 = vmatprep.subr.bf16.mxu0 %v3767_v48  ;;  %2275 = vmatprep.subr.bf16.mxu1 %v3895_v52  ;;  %v807_v43 = vld [vmem:[#allocation14 + $0x5a8] sm:$0xff] }
 0x23d   :  { %v667_v48 = vld [vmem:[#allocation14 + $0x148] sm:$0xff]  ;;  %v3872_v55 = vcombine.low %v803_v42, %v807_v43 }
 0x23e   :  { %v795_v52 = vld [vmem:[#allocation14 + $0x548] sm:$0xff] }
 0x23f   :  { %2233 = vmatpush2.bf16.msra.mxu0 %v3766_v50  ;;  %2276 = vmatpush2.bf16.msra.mxu1 %v3894_v51  ;;  %v3873_v50 = vcombine.high %v803_v42, %v807_v43  ;;  %v671_v51 = vld [vmem:[#allocation14 + $0x168] sm:$0xff]  ;;  %v3865_v57 = vcombine.high %v795_v52, %v799_v53  ;;  %v3864_v63 = vcombine.low %v795_v52, %v799_v53 }
 0x240   :  { %2234 = vmatprep.subr.bf16.mxu0 %v3759_v56  ;;  %2277 = vmatprep.subr.bf16.mxu1 %v3887_v60  ;;  %v3737_v56 = vcombine.high %v667_v48, %v671_v51  ;;  %v787_v60 = vld [vmem:[#allocation14 + $0x508] sm:$0xff]  ;;  %v3736_v62 = vcombine.low %v667_v48, %v671_v51 }
 0x241   :  { %v3857_v1 = vcombine.high %v787_v60, %v791_v61  ;;  %v879_v42 = vld [vmem:[#allocation14 + $0x7e8] sm:$0xff] }
 0x242   :  { %v739_v51 = vld [vmem:[#allocation14 + $0x388] sm:$0xff] }
 0x243   :  { %2235 = vmatpush2.bf16.msra.mxu0 %v3758_v58  ;;  %2278 = vmatpush2.bf16.msra.mxu1 %v3886_v59  ;;  %v659_v58 = vld [vmem:[#allocation14 + $0x108] sm:$0xff] }
 0x244   :  { %2290 = vmatprep.subr.bf16.mxu0 %v3753_v0  ;;  %2333 = vmatprep.subr.bf16.mxu1 %v3881_v4  ;;  %v663_v59 = vld [vmem:[#allocation14 + $0x128] sm:$0xff] }
 0x245   :  { %v3729_v0 = vcombine.high %v659_v58, %v663_v59  ;;  %v779_v4 = vld [vmem:[#allocation14 + $0x4c8] sm:$0xff]  ;;  %v3728_v11 = vcombine.low %v659_v58, %v663_v59 }
 0x246   :  { %v743_v52 = vld [vmem:[#allocation14 + $0x3a8] sm:$0xff] }
 0x247   :  { %v867_v53 = vld [vmem:[#allocation14 + $0x788] sm:$0xff] }
 0x248   :  { %v731_v59 = vld [vmem:[#allocation14 + $0x348] sm:$0xff] }
 0x2c6   :  { %v562_v12 = vpop.f32.mrf.mxu0  ;;  %v605_v13 = vpop.f32.mrf.mxu1 }
 0x2c7   :  { %v563_v26 = vadd.f32 %v562_v12, %v351_v16  ;;  %v606_v27 = vadd.f32 %v605_v13, %v359_v17  ;;  %v3856_v12 = vcombine.low %v787_v60, %v791_v61  ;;  %v735_v60 = vld [vmem:[#allocation14 + $0x368] sm:$0xff] }
 0x2c8   :  { %v564_v18 = vpop.f32.mrf.mxu0  ;;  %v607_v19 = vpop.f32.mrf.mxu1  ;;  %v859_v61 = vld [vmem:[#allocation14 + $0x748] sm:$0xff] }
 0x2c9   :  { %v565_v22 = vadd.f32 %v564_v18, %v355_v14  ;;  %v608_v23 = vadd.f32 %v607_v19, %v363_v15  ;;  %v614_v39 = vmax.f32 %v563_v26, 0.0  ;;  %v616_v40 = vmax.f32 %v606_v27, 0.0  ;;  %v775_v18 = vld [vmem:[#allocation14 + $0x4a8] sm:$0xff] }
 0x2ca   :  { %v566_v20 = vpop.f32.mrf.mxu0  ;;  %v609_v21 = vpop.f32.mrf.mxu1  ;;  %v767_v26 = vld [vmem:[#allocation14 + $0x468] sm:$0xff] }
 0x2cb   :  { %v567_v24 = vadd.f32 %v566_v20, %v351_v16  ;;  %v610_v25 = vadd.f32 %v609_v21, %v359_v17  ;;  %v615_v34 = vmax.f32 %v565_v22, 0.0  ;;  %v617_v35 = vmax.f32 %v608_v23, 0.0  ;;  %v647_v16 = vld [vmem:[#allocation14 + $0xa8] sm:$0xff] }
 0x2cc   :  { %v568_v28 = vpop.f32.mrf.mxu0  ;;  %v611_v29 = vpop.f32.mrf.mxu1  ;;  %v771_v17 = vld [vmem:[#allocation14 + $0x488] sm:$0xff]  ;;  %v3848_v20 = vcombine.low %v779_v4, %v783_v5 }
 0x2cd   :  { %v569_v30 = vadd.f32 %v568_v28, %v355_v14  ;;  %v612_v31 = vadd.f32 %v611_v29, %v363_v15  ;;  %v618_v32 = vmax.f32 %v567_v24, 0.0  ;;  %v620_v33 = vmax.f32 %v610_v25, 0.0  ;;  %v643_v15 = vld [vmem:[#allocation14 + $0x88] sm:$0xff] }
 0x2ce   :  { %v3849_v14 = vcombine.high %v779_v4, %v783_v5  ;;  %v3713_v21 = vcombine.high %v643_v15, %v647_v16  ;;  %v3841_v22 = vcombine.high %v771_v17, %v775_v18  ;;  %v635_v23 = vld [vmem:[#allocation14 + $0x48] sm:$0xff]  ;;  %v3712_v27 = vcombine.low %v643_v15, %v647_v16 }
 0x2cf   :  { %v619_v36 = vmax.f32 %v569_v30, 0.0  ;;  %v621_v37 = vmax.f32 %v612_v31, 0.0  ;;  %v4748_v46 = vpack.c.bf16 %v618_v32, %v614_v39  ;;  %v4750_v47 = vpack.c.bf16 %v620_v33, %v616_v40  ;;  %v639_v24 = vld [vmem:[#allocation14 + $0x68] sm:$0xff] }
 0x2d0   :  { %v763_v25 = vld [vmem:[#allocation14 + $0x448] sm:$0xff]  ;;  %v3840_v28 = vcombine.low %v771_v17, %v775_v18  ;;  %v3705_v29 = vcombine.high %v635_v23, %v639_v24 }
 0x2d1   :  { %v4744_v44 = vpack.c.bf16 %v619_v36, %v615_v34  ;;  %v4746_v45 = vpack.c.bf16 %v621_v37, %v617_v35  ;;  %v3833_v30 = vcombine.high %v763_v25, %v767_v26  ;;  %v627_v31 = vld [vmem:[#allocation14 + $0x8] sm:$0xff]  ;;  %v3704_v35 = vcombine.low %v635_v23, %v639_v24 }
 0x2d2   :  { %v631_v32 = vld [vmem:[#allocation14 + $0x28] sm:$0xff]  ;;  %v3832_v36 = vcombine.low %v763_v25, %v767_v26 }
 0x2d3   :  { %2236 = vmatprep.mubr.bf16.mxu0 %v4744_v44  ;;  %2279 = vmatprep.mubr.bf16.mxu1 %v4746_v45  ;;  %v755_v33 = vld [vmem:[#allocation14 + $0x408] sm:$0xff]  ;;  %v3697_v37 = vcombine.high %v627_v31, %v631_v32  ;;  %v3696_v43 = vcombine.low %v627_v31, %v631_v32 }
 0x2d4   :  { %2237 = vmatmul.mubr.bf16.vlgmr.msra.gmra.mxu0 %v4748_v46  ;;  %2280 = vmatmul.mubr.bf16.vlgmr.msra.gmra.mxu1 %v4750_v47  ;;  %v759_v34 = vld [vmem:[#allocation14 + $0x428] sm:$0xff] }
 0x2d5   :  { %2291 = vmatpush1.bf16.msra.mxu0 %v3752_v2  ;;  %2334 = vmatpush1.bf16.msra.mxu1 %v3880_v3  ;;  %v651_v2 = vld [vmem:[#allocation14 + $0xc8] sm:$0xff]  ;;  %v3825_v38 = vcombine.high %v755_v33, %v759_v34  ;;  %v3824_v48 = vcombine.low %v755_v33, %v759_v34 }
 0x2d6   :  { %2322 = vmatprep.mubr.bf16.mxu0 %v4744_v44  ;;  %2365 = vmatprep.mubr.bf16.mxu1 %v4746_v45  ;;  %v655_v3 = vld [vmem:[#allocation14 + $0xe8] sm:$0xff] }
 0x2d7   :  { %2292 = vmatprep.subr.bf16.mxu0 %v3745_v49  ;;  %2335 = vmatprep.subr.bf16.mxu1 %v3873_v50  ;;  %v3721_v13 = vcombine.high %v651_v2, %v655_v3  ;;  %v3720_v19 = vcombine.low %v651_v2, %v655_v3  ;;  %v747_v39 = vld [vmem:[#allocation14 + $0x3c8] sm:$0xff]  ;;  %v3945_v50 = vcombine.high %v875_v41, %v879_v42 }
 0x2d8   :  { %v751_v40 = vld [vmem:[#allocation14 + $0x3e8] sm:$0xff] }
 0x2d9   :  { %2293 = vmatpush1.bf16.msra.mxu0 %v3744_v54  ;;  %2336 = vmatpush1.bf16.msra.mxu1 %v3872_v55  ;;  %v3817_v49 = vcombine.high %v747_v39, %v751_v40  ;;  %v871_v54 = vld [vmem:[#allocation14 + $0x7a8] sm:$0xff]  ;;  %v3816_v55 = vcombine.low %v747_v39, %v751_v40 }
 0x2da   :  { %2294 = vmatprep.subr.bf16.mxu0 %v3737_v56  ;;  %2337 = vmatprep.subr.bf16.mxu1 %v3865_v57  ;;  %v3944_v56 = vcombine.low %v875_v41, %v879_v42  ;;  %v3809_v57 = vcombine.high %v739_v51, %v743_v52  ;;  %v3937_v58 = vcombine.high %v867_v53, %v871_v54  ;;  %v723_v3 = vld [vmem:[#allocation14 + $0x308] sm:$0xff] }
 0x2db   :  { %v727_v4 = vld [vmem:[#allocation14 + $0x328] sm:$0xff] }
 0x2dc   :  { %v851_v5 = vld [vmem:[#allocation14 + $0x708] sm:$0xff] }
 0x2dd   :  { %2295 = vmatpush1.bf16.msra.mxu0 %v3736_v62  ;;  %2338 = vmatpush1.bf16.msra.mxu1 %v3864_v63  ;;  %v863_v62 = vld [vmem:[#allocation14 + $0x768] sm:$0xff]  ;;  %v3808_v63 = vcombine.low %v739_v51, %v743_v52  ;;  %v684_v52 = vld [vmem:[#allocation14 + $0x1d0] sm:$0xff] }
 0x2de   :  { %2296 = vmatprep.subr.bf16.mxu0 %v3729_v0  ;;  %2339 = vmatprep.subr.bf16.mxu1 %v3857_v1  ;;  %v3936_v0 = vcombine.low %v867_v53, %v871_v54  ;;  %v3801_v1 = vcombine.high %v731_v59, %v735_v60  ;;  %v3929_v2 = vcombine.high %v859_v61, %v863_v62  ;;  %v715_v16 = vld [vmem:[#allocation14 + $0x2c8] sm:$0xff]  ;;  %v688_v53 = vld [vmem:[#allocation14 + $0x1f0] sm:$0xff] }
 0x2df   :  { %v719_v17 = vld [vmem:[#allocation14 + $0x2e8] sm:$0xff]  ;;  %v812_v54 = vld [vmem:[#allocation14 + $0x5d0] sm:$0xff] }
 0x2e0   :  { %v843_v18 = vld [vmem:[#allocation14 + $0x6c8] sm:$0xff] }
 0x2e1   :  { %2297 = vmatpush1.bf16.msra.mxu0 %v3728_v11  ;;  %2340 = vmatpush1.bf16.msra.mxu1 %v3856_v12  ;;  %v855_v11 = vld [vmem:[#allocation14 + $0x728] sm:$0xff]  ;;  %v3800_v12 = vcombine.low %v731_v59, %v735_v60  ;;  %v676_v60 = vld [vmem:[#allocation14 + $0x190] sm:$0xff] }
 0x2e2   :  { %2298 = vmatprep.subr.bf16.mxu0 %v3721_v13  ;;  %2341 = vmatprep.subr.bf16.mxu1 %v3849_v14  ;;  %v3928_v13 = vcombine.low %v859_v61, %v863_v62  ;;  %v3793_v14 = vcombine.high %v723_v3, %v727_v4  ;;  %v3921_v15 = vcombine.high %v851_v5, %v855_v11  ;;  %v707_v24 = vld [vmem:[#allocation14 + $0x288] sm:$0xff]  ;;  %v680_v61 = vld [vmem:[#allocation14 + $0x1b0] sm:$0xff] }
 0x2e3   :  { %v711_v25 = vld [vmem:[#allocation14 + $0x2a8] sm:$0xff]  ;;  %v804_v62 = vld [vmem:[#allocation14 + $0x590] sm:$0xff] }
 0x2e4   :  { %v835_v26 = vld [vmem:[#allocation14 + $0x688] sm:$0xff] }
 0x2e5   :  { %2299 = vmatpush1.bf16.msra.mxu0 %v3720_v19  ;;  %2342 = vmatpush1.bf16.msra.mxu1 %v3848_v20  ;;  %v847_v19 = vld [vmem:[#allocation14 + $0x6e8] sm:$0xff]  ;;  %v3792_v20 = vcombine.low %v723_v3, %v727_v4  ;;  %v668_v4 = vld [vmem:[#allocation14 + $0x150] sm:$0xff] }
 0x2e6   :  { %2300 = vmatprep.subr.bf16.mxu0 %v3713_v21  ;;  %2343 = vmatprep.subr.bf16.mxu1 %v3841_v22  ;;  %v3920_v21 = vcombine.low %v851_v5, %v855_v11  ;;  %v3785_v22 = vcombine.high %v715_v16, %v719_v17  ;;  %v3913_v23 = vcombine.high %v843_v18, %v847_v19  ;;  %v699_v32 = vld [vmem:[#allocation14 + $0x248] sm:$0xff]  ;;  %v672_v5 = vld [vmem:[#allocation14 + $0x170] sm:$0xff] }
 0x2e7   :  { %v703_v33 = vld [vmem:[#allocation14 + $0x268] sm:$0xff]  ;;  %v796_v11 = vld [vmem:[#allocation14 + $0x550] sm:$0xff] }
 0x2e8   :  { %v827_v34 = vld [vmem:[#allocation14 + $0x648] sm:$0xff] }
 0x2e9   :  { %2301 = vmatpush1.bf16.msra.mxu0 %v3712_v27  ;;  %2344 = vmatpush1.bf16.msra.mxu1 %v3840_v28  ;;  %v839_v27 = vld [vmem:[#allocation14 + $0x6a8] sm:$0xff]  ;;  %v3784_v28 = vcombine.low %v715_v16, %v719_v17  ;;  %v660_v17 = vld [vmem:[#allocation14 + $0x110] sm:$0xff] }
 0x2ea   :  { %2302 = vmatprep.subr.bf16.mxu0 %v3705_v29  ;;  %2345 = vmatprep.subr.bf16.mxu1 %v3833_v30  ;;  %v3912_v29 = vcombine.low %v843_v18, %v847_v19  ;;  %v3777_v30 = vcombine.high %v707_v24, %v711_v25  ;;  %v3905_v31 = vcombine.high %v835_v26, %v839_v27  ;;  %v691_v40 = vld [vmem:[#allocation14 + $0x208] sm:$0xff]  ;;  %v664_v18 = vld [vmem:[#allocation14 + $0x130] sm:$0xff] }
 0x2eb   :  { %v695_v41 = vld [vmem:[#allocation14 + $0x228] sm:$0xff]  ;;  %v788_v19 = vld [vmem:[#allocation14 + $0x510] sm:$0xff] }
 0x2ec   :  { %v819_v42 = vld [vmem:[#allocation14 + $0x608] sm:$0xff] }
 0x2ed   :  { %2303 = vmatpush1.bf16.msra.mxu0 %v3704_v35  ;;  %2346 = vmatpush1.bf16.msra.mxu1 %v3832_v36  ;;  %v831_v35 = vld [vmem:[#allocation14 + $0x668] sm:$0xff]  ;;  %v3776_v36 = vcombine.low %v707_v24, %v711_v25  ;;  %v652_v25 = vld [vmem:[#allocation14 + $0xd0] sm:$0xff] }
 0x2ee   :  { %2304 = vmatprep.subr.bf16.mxu0 %v3697_v37  ;;  %2347 = vmatprep.subr.bf16.mxu1 %v3825_v38  ;;  %v3904_v37 = vcombine.low %v835_v26, %v839_v27  ;;  %v3769_v38 = vcombine.high %v699_v32, %v703_v33  ;;  %v3897_v39 = vcombine.high %v827_v34, %v831_v35  ;;  %v656_v26 = vld [vmem:[#allocation14 + $0xf0] sm:$0xff] }
 0x2ef   :  { %v780_v27 = vld [vmem:[#allocation14 + $0x4d0] sm:$0xff] }
 0x2f1   :  { %2305 = vmatpush1.bf16.msra.mxu0 %v3696_v43  ;;  %2348 = vmatpush1.bf16.msra.mxu1 %v3824_v48  ;;  %v823_v43 = vld [vmem:[#allocation14 + $0x628] sm:$0xff]  ;;  %v3768_v48 = vcombine.low %v699_v32, %v703_v33  ;;  %v644_v33 = vld [vmem:[#allocation14 + $0x90] sm:$0xff] }
 0x2f2   :  { %2306 = vmatprep.subr.bf16.mxu0 %v3817_v49  ;;  %2349 = vmatprep.subr.bf16.mxu1 %v3945_v50  ;;  %v3896_v49 = vcombine.low %v827_v34, %v831_v35  ;;  %v3761_v50 = vcombine.high %v691_v40, %v695_v41  ;;  %v3889_v51 = vcombine.high %v819_v42, %v823_v43  ;;  %v648_v34 = vld [vmem:[#allocation14 + $0xb0] sm:$0xff] }
 0x2f3   :  { %v772_v35 = vld [vmem:[#allocation14 + $0x490] sm:$0xff] }
 0x2f5   :  { %2307 = vmatpush2.bf16.msra.mxu0 %v3816_v55  ;;  %2350 = vmatpush2.bf16.msra.mxu1 %v3944_v56  ;;  %v816_v55 = vld [vmem:[#allocation14 + $0x5f0] sm:$0xff]  ;;  %v3760_v56 = vcombine.low %v691_v40, %v695_v41 }
 0x2f6   :  { %2308 = vmatprep.subr.bf16.mxu0 %v3809_v57  ;;  %2351 = vmatprep.subr.bf16.mxu1 %v3937_v58  ;;  %v3888_v57 = vcombine.low %v819_v42, %v823_v43  ;;  %v3755_v58 = vcombine.high %v684_v52, %v688_v53  ;;  %v3883_v59 = vcombine.high %v812_v54, %v816_v55  ;;  %v636_v41 = vld [vmem:[#allocation14 + $0x50] sm:$0xff] }
 0x2f7   :  { %v640_v42 = vld [vmem:[#allocation14 + $0x70] sm:$0xff] }
 0x2f8   :  { %v764_v43 = vld [vmem:[#allocation14 + $0x450] sm:$0xff] }
 0x2f9   :  { %2309 = vmatpush2.bf16.msra.mxu0 %v3808_v63  ;;  %2352 = vmatpush2.bf16.msra.mxu1 %v3936_v0  ;;  %v808_v63 = vld [vmem:[#allocation14 + $0x5b0] sm:$0xff]  ;;  %v3754_v0 = vcombine.low %v684_v52, %v688_v53 }
 0x2fa   :  { %2310 = vmatprep.subr.bf16.mxu0 %v3801_v1  ;;  %2353 = vmatprep.subr.bf16.mxu1 %v3929_v2  ;;  %v3882_v1 = vcombine.low %v812_v54, %v816_v55  ;;  %v3747_v2 = vcombine.high %v676_v60, %v680_v61  ;;  %v3875_v3 = vcombine.high %v804_v62, %v808_v63  ;;  %v628_v53 = vld [vmem:[#allocation14 + $0x10] sm:$0xff] }
 0x2fb   :  { %v632_v54 = vld [vmem:[#allocation14 + $0x30] sm:$0xff] }
 0x2fc   :  { %v756_v55 = vld [vmem:[#allocation14 + $0x410] sm:$0xff] }
 0x2fd   :  { %2311 = vmatpush2.bf16.msra.mxu0 %v3800_v12  ;;  %2354 = vmatpush2.bf16.msra.mxu1 %v3928_v13  ;;  %v800_v12 = vld [vmem:[#allocation14 + $0x570] sm:$0xff]  ;;  %v3746_v13 = vcombine.low %v676_v60, %v680_v61 }
 0x2fe   :  { %2312 = vmatprep.subr.bf16.mxu0 %v3793_v14  ;;  %2355 = vmatprep.subr.bf16.mxu1 %v3921_v15  ;;  %v3874_v14 = vcombine.low %v804_v62, %v808_v63  ;;  %v3739_v15 = vcombine.high %v668_v4, %v672_v5  ;;  %v3867_v16 = vcombine.high %v796_v11, %v800_v12  ;;  %v748_v61 = vld [vmem:[#allocation14 + $0x3d0] sm:$0xff] }
 0x2ff   :  { %v752_v62 = vld [vmem:[#allocation14 + $0x3f0] sm:$0xff] }
 0x300   :  { %v876_v63 = vld [vmem:[#allocation14 + $0x7d0] sm:$0xff] }
 0x301   :  { %2313 = vmatpush2.bf16.msra.mxu0 %v3792_v20  ;;  %2356 = vmatpush2.bf16.msra.mxu1 %v3920_v21  ;;  %v792_v20 = vld [vmem:[#allocation14 + $0x530] sm:$0xff]  ;;  %v3738_v21 = vcombine.low %v668_v4, %v672_v5 }
 0x302   :  { %2314 = vmatprep.subr.bf16.mxu0 %v3785_v22  ;;  %2357 = vmatprep.subr.bf16.mxu1 %v3913_v23  ;;  %v3866_v22 = vcombine.low %v796_v11, %v800_v12  ;;  %v3731_v23 = vcombine.high %v660_v17, %v664_v18  ;;  %v3859_v24 = vcombine.high %v788_v19, %v792_v20  ;;  %v740_v5 = vld [vmem:[#allocation14 + $0x390] sm:$0xff] }
 0x303   :  { %v744_v11 = vld [vmem:[#allocation14 + $0x3b0] sm:$0xff] }
 0x304   :  { %v868_v12 = vld [vmem:[#allocation14 + $0x790] sm:$0xff] }
 0x305   :  { %2315 = vmatpush2.bf16.msra.mxu0 %v3784_v28  ;;  %2358 = vmatpush2.bf16.msra.mxu1 %v3912_v29  ;;  %v784_v28 = vld [vmem:[#allocation14 + $0x4f0] sm:$0xff]  ;;  %v3730_v29 = vcombine.low %v660_v17, %v664_v18 }
 0x306   :  { %2316 = vmatprep.subr.bf16.mxu0 %v3777_v30  ;;  %2359 = vmatprep.subr.bf16.mxu1 %v3905_v31  ;;  %v3858_v30 = vcombine.low %v788_v19, %v792_v20  ;;  %v3723_v31 = vcombine.high %v652_v25, %v656_v26  ;;  %v3851_v32 = vcombine.high %v780_v27, %v784_v28  ;;  %v732_v18 = vld [vmem:[#allocation14 + $0x350] sm:$0xff] }
 0x307   :  { %v736_v19 = vld [vmem:[#allocation14 + $0x370] sm:$0xff] }
 0x308   :  { %v860_v20 = vld [vmem:[#allocation14 + $0x750] sm:$0xff] }
 0x309   :  { %2317 = vmatpush2.bf16.msra.mxu0 %v3776_v36  ;;  %2360 = vmatpush2.bf16.msra.mxu1 %v3904_v37  ;;  %v776_v36 = vld [vmem:[#allocation14 + $0x4b0] sm:$0xff]  ;;  %v3722_v37 = vcombine.low %v652_v25, %v656_v26 }
 0x30a   :  { %2318 = vmatprep.subr.bf16.mxu0 %v3769_v38  ;;  %2361 = vmatprep.subr.bf16.mxu1 %v3897_v39  ;;  %v3850_v38 = vcombine.low %v780_v27, %v784_v28  ;;  %v3715_v39 = vcombine.high %v644_v33, %v648_v34  ;;  %v3843_v40 = vcombine.high %v772_v35, %v776_v36  ;;  %v724_v26 = vld [vmem:[#allocation14 + $0x310] sm:$0xff] }
 0x30b   :  { %v728_v27 = vld [vmem:[#allocation14 + $0x330] sm:$0xff] }
 0x30c   :  { %v852_v28 = vld [vmem:[#allocation14 + $0x710] sm:$0xff] }
 0x30d   :  { %2319 = vmatpush2.bf16.msra.mxu0 %v3768_v48  ;;  %2362 = vmatpush2.bf16.msra.mxu1 %v3896_v49  ;;  %v768_v48 = vld [vmem:[#allocation14 + $0x470] sm:$0xff]  ;;  %v3714_v49 = vcombine.low %v644_v33, %v648_v34 }
 0x30e   :  { %2320 = vmatprep.subr.bf16.mxu0 %v3761_v50  ;;  %2363 = vmatprep.subr.bf16.mxu1 %v3889_v51  ;;  %v3842_v50 = vcombine.low %v772_v35, %v776_v36  ;;  %v3707_v51 = vcombine.high %v636_v41, %v640_v42  ;;  %v3835_v52 = vcombine.high %v764_v43, %v768_v48  ;;  %v716_v34 = vld [vmem:[#allocation14 + $0x2d0] sm:$0xff] }
 0x30f   :  { %v720_v35 = vld [vmem:[#allocation14 + $0x2f0] sm:$0xff] }
 0x310   :  { %v844_v36 = vld [vmem:[#allocation14 + $0x6d0] sm:$0xff] }
 0x311   :  { %2321 = vmatpush2.bf16.msra.mxu0 %v3760_v56  ;;  %2364 = vmatpush2.bf16.msra.mxu1 %v3888_v57  ;;  %v760_v56 = vld [vmem:[#allocation14 + $0x430] sm:$0xff]  ;;  %v3706_v57 = vcombine.low %v636_v41, %v640_v42 }
 0x312   :  { %2376 = vmatprep.subr.bf16.mxu0 %v3755_v58  ;;  %2419 = vmatprep.subr.bf16.mxu1 %v3883_v59  ;;  %v3834_v58 = vcombine.low %v764_v43, %v768_v48  ;;  %v3699_v59 = vcombine.high %v628_v53, %v632_v54  ;;  %v3827_v60 = vcombine.high %v756_v55, %v760_v56  ;;  %v708_v42 = vld [vmem:[#allocation14 + $0x290] sm:$0xff] }
 0x313   :  { %v712_v43 = vld [vmem:[#allocation14 + $0x2b0] sm:$0xff] }
 0x314   :  { %2323 = vmatmul.mubr.bf16.vlgmr.msra.gmra.mxu0 %v4748_v46  ;;  %2366 = vmatmul.mubr.bf16.vlgmr.msra.gmra.mxu1 %v4750_v47  ;;  %v836_v48 = vld [vmem:[#allocation14 + $0x690] sm:$0xff] }
 0x315   :  { %2377 = vmatpush1.bf16.msra.mxu0 %v3754_v0  ;;  %2408 = vmatprep.mubr.bf16.mxu0 %v4744_v44  ;;  %v880_v0 = vld [vmem:[#allocation14 + $0x7f0] sm:$0xff] }
 0x316   :  { %2420 = vmatpush1.bf16.msra.mxu1 %v3882_v1  ;;  %2451 = vmatprep.mubr.bf16.mxu1 %v4746_v45  ;;  %v3698_v1 = vcombine.low %v628_v53, %v632_v54  ;;  %v3947_v4 = vcombine.high %v876_v63, %v880_v0  ;;  %v700_v54 = vld [vmem:[#allocation14 + $0x250] sm:$0xff] }
 0x317   :  { %2378 = vmatprep.subr.bf16.mxu0 %v3747_v2  ;;  %2421 = vmatprep.subr.bf16.mxu1 %v3875_v3  ;;  %v3826_v2 = vcombine.low %v756_v55, %v760_v56  ;;  %v3819_v3 = vcombine.high %v748_v61, %v752_v62  ;;  %v704_v55 = vld [vmem:[#allocation14 + $0x270] sm:$0xff] }
 0x318   :  { %v828_v56 = vld [vmem:[#allocation14 + $0x650] sm:$0xff] }
 0x319   :  { %2379 = vmatpush1.bf16.msra.mxu0 %v3746_v13  ;;  %v872_v13 = vld [vmem:[#allocation14 + $0x7b0] sm:$0xff] }
 0x31a   :  { %2422 = vmatpush1.bf16.msra.mxu1 %v3874_v14  ;;  %2380 = vmatprep.subr.bf16.mxu0 %v3739_v15  ;;  %v3818_v14 = vcombine.low %v748_v61, %v752_v62  ;;  %v3946_v15 = vcombine.low %v876_v63, %v880_v0  ;;  %v3939_v17 = vcombine.high %v868_v12, %v872_v13  ;;  %v692_v62 = vld [vmem:[#allocation14 + $0x210] sm:$0xff] }
 0x31b   :  { %2423 = vmatprep.subr.bf16.mxu1 %v3867_v16  ;;  %v3811_v16 = vcombine.high %v740_v5, %v744_v11  ;;  %v696_v63 = vld [vmem:[#allocation14 + $0x230] sm:$0xff] }
 0x31c   :  { %v820_v0 = vld [vmem:[#allocation14 + $0x610] sm:$0xff] }
 0x31d   :  { %2381 = vmatpush1.bf16.msra.mxu0 %v3738_v21  ;;  %v864_v21 = vld [vmem:[#allocation14 + $0x770] sm:$0xff] }
 0x31e   :  { %2424 = vmatpush1.bf16.msra.mxu1 %v3866_v22  ;;  %2382 = vmatprep.subr.bf16.mxu0 %v3731_v23  ;;  %v3810_v22 = vcombine.low %v740_v5, %v744_v11  ;;  %v3938_v23 = vcombine.low %v868_v12, %v872_v13  ;;  %v3931_v25 = vcombine.high %v860_v20, %v864_v21  ;;  %v685_v11 = vld [vmem:[#allocation14 + $0x1d8] sm:$0xff] }
 0x31f   :  { %2425 = vmatprep.subr.bf16.mxu1 %v3859_v24  ;;  %v3803_v24 = vcombine.high %v732_v18, %v736_v19  ;;  %v689_v12 = vld [vmem:[#allocation14 + $0x1f8] sm:$0xff] }
 0x320   :  { %v813_v13 = vld [vmem:[#allocation14 + $0x5d8] sm:$0xff] }
 0x321   :  { %2383 = vmatpush1.bf16.msra.mxu0 %v3730_v29  ;;  %v856_v29 = vld [vmem:[#allocation14 + $0x730] sm:$0xff] }
 0x322   :  { %2426 = vmatpush1.bf16.msra.mxu1 %v3858_v30  ;;  %2384 = vmatprep.subr.bf16.mxu0 %v3723_v31  ;;  %v3802_v30 = vcombine.low %v732_v18, %v736_v19  ;;  %v3930_v31 = vcombine.low %v860_v20, %v864_v21  ;;  %v3923_v33 = vcombine.high %v852_v28, %v856_v29  ;;  %v677_v19 = vld [vmem:[#allocation14 + $0x198] sm:$0xff] }
 0x323   :  { %2427 = vmatprep.subr.bf16.mxu1 %v3851_v32  ;;  %v3795_v32 = vcombine.high %v724_v26, %v728_v27  ;;  %v681_v20 = vld [vmem:[#allocation14 + $0x1b8] sm:$0xff]  ;;  %v3756_v21 = vcombine.low %v685_v11, %v689_v12 }
 0x325   :  { %2385 = vmatpush1.bf16.msra.mxu0 %v3722_v37  ;;  %v848_v37 = vld [vmem:[#allocation14 + $0x6f0] sm:$0xff] }
 0x326   :  { %2428 = vmatpush1.bf16.msra.mxu1 %v3850_v38  ;;  %2386 = vmatprep.subr.bf16.mxu0 %v3715_v39  ;;  %v3794_v38 = vcombine.low %v724_v26, %v728_v27  ;;  %v3922_v39 = vcombine.low %v852_v28, %v856_v29  ;;  %v3915_v41 = vcombine.high %v844_v36, %v848_v37  ;;  %v669_v26 = vld [vmem:[#allocation14 + $0x158] sm:$0xff] }
 0x327   :  { %2429 = vmatprep.subr.bf16.mxu1 %v3843_v40  ;;  %v3787_v40 = vcombine.high %v716_v34, %v720_v35  ;;  %v673_v27 = vld [vmem:[#allocation14 + $0x178] sm:$0xff] }
 0x328   :  { %v797_v29 = vld [vmem:[#allocation14 + $0x558] sm:$0xff] }
 0x329   :  { %2387 = vmatpush1.bf16.msra.mxu0 %v3714_v49  ;;  %v840_v49 = vld [vmem:[#allocation14 + $0x6b0] sm:$0xff] }
 0x32a   :  { %2430 = vmatpush1.bf16.msra.mxu1 %v3842_v50  ;;  %2388 = vmatprep.subr.bf16.mxu0 %v3707_v51  ;;  %v3786_v50 = vcombine.low %v716_v34, %v720_v35  ;;  %v3914_v51 = vcombine.low %v844_v36, %v848_v37  ;;  %v3907_v53 = vcombine.high %v836_v48, %v840_v49  ;;  %v661_v35 = vld [vmem:[#allocation14 + $0x118] sm:$0xff] }
 0x32b   :  { %2431 = vmatprep.subr.bf16.mxu1 %v3835_v52  ;;  %v3779_v52 = vcombine.high %v708_v42, %v712_v43  ;;  %v665_v36 = vld [vmem:[#allocation14 + $0x138] sm:$0xff] }
 0x32c   :  { %v789_v37 = vld [vmem:[#allocation14 + $0x518] sm:$0xff] }
 0x32d   :  { %2389 = vmatpush1.bf16.msra.mxu0 %v3706_v57  ;;  %v832_v57 = vld [vmem:[#allocation14 + $0x670] sm:$0xff] }
 0x32e   :  { %2432 = vmatpush1.bf16.msra.mxu1 %v3834_v58  ;;  %2390 = vmatprep.subr.bf16.mxu0 %v3699_v59  ;;  %v3778_v58 = vcombine.low %v708_v42, %v712_v43  ;;  %v3906_v59 = vcombine.low %v836_v48, %v840_v49  ;;  %v3899_v61 = vcombine.high %v828_v56, %v832_v57  ;;  %v653_v42 = vld [vmem:[#allocation14 + $0xd8] sm:$0xff] }
 0x32f   :  { %2433 = vmatprep.subr.bf16.mxu1 %v3827_v60  ;;  %v3771_v60 = vcombine.high %v700_v54, %v704_v55  ;;  %v657_v43 = vld [vmem:[#allocation14 + $0xf8] sm:$0xff] }
 0x330   :  { %v781_v48 = vld [vmem:[#allocation14 + $0x4d8] sm:$0xff] }
 0x331   :  { %2391 = vmatpush1.bf16.msra.mxu0 %v3698_v1  ;;  %v824_v1 = vld [vmem:[#allocation14 + $0x630] sm:$0xff]  ;;  %v785_v49 = vld [vmem:[#allocation14 + $0x4f8] sm:$0xff] }
 0x332   :  { %2434 = vmatpush1.bf16.msra.mxu1 %v3826_v2  ;;  %2392 = vmatprep.subr.bf16.mxu0 %v3819_v3  ;;  %v3770_v2 = vcombine.low %v700_v54, %v704_v55  ;;  %v3898_v3 = vcombine.low %v828_v56, %v832_v57  ;;  %v3891_v5 = vcombine.high %v820_v0, %v824_v1  ;;  %v649_v54 = vld [vmem:[#allocation14 + $0xb8] sm:$0xff] }
 0x333   :  { %2435 = vmatprep.subr.bf16.mxu1 %v3947_v4  ;;  %v3763_v4 = vcombine.high %v692_v62, %v696_v63  ;;  %v773_v55 = vld [vmem:[#allocation14 + $0x498] sm:$0xff]  ;;  %v3724_v57 = vcombine.low %v653_v42, %v657_v43 }
 0x334   :  { %v777_v56 = vld [vmem:[#allocation14 + $0x4b8] sm:$0xff] }
 0x335   :  { %2393 = vmatpush2.bf16.msra.mxu0 %v3818_v14  ;;  %v817_v14 = vld [vmem:[#allocation14 + $0x5f8] sm:$0xff] }
 0x336   :  { %2436 = vmatpush2.bf16.msra.mxu1 %v3946_v15  ;;  %2394 = vmatprep.subr.bf16.mxu0 %v3811_v16  ;;  %v3762_v15 = vcombine.low %v692_v62, %v696_v63  ;;  %v3890_v16 = vcombine.low %v820_v0, %v824_v1  ;;  %v3885_v18 = vcombine.high %v813_v13, %v817_v14  ;;  %v641_v62 = vld [vmem:[#allocation14 + $0x78] sm:$0xff] }
 0x337   :  { %2437 = vmatprep.subr.bf16.mxu1 %v3939_v17  ;;  %v3757_v17 = vcombine.high %v685_v11, %v689_v12  ;;  %v765_v63 = vld [vmem:[#allocation14 + $0x458] sm:$0xff] }
 0x338   :  { %v769_v0 = vld [vmem:[#allocation14 + $0x478] sm:$0xff] }
 0x339   :  { %2395 = vmatpush2.bf16.msra.mxu0 %v3810_v22  ;;  %v805_v22 = vld [vmem:[#allocation14 + $0x598] sm:$0xff] }
 0x33a   :  { %2438 = vmatpush2.bf16.msra.mxu1 %v3938_v23  ;;  %2396 = vmatprep.subr.bf16.mxu0 %v3803_v24  ;;  %v809_v23 = vld [vmem:[#allocation14 + $0x5b8] sm:$0xff]  ;;  %v3884_v24 = vcombine.low %v813_v13, %v817_v14 }
 0x33b   :  { %2439 = vmatprep.subr.bf16.mxu1 %v3931_v25  ;;  %v3749_v25 = vcombine.high %v677_v19, %v681_v20  ;;  %v3877_v28 = vcombine.high %v805_v22, %v809_v23  ;;  %v633_v11 = vld [vmem:[#allocation14 + $0x38] sm:$0xff] }
 0x33c   :  { %v757_v12 = vld [vmem:[#allocation14 + $0x418] sm:$0xff] }
 0x33d   :  { %2397 = vmatpush2.bf16.msra.mxu0 %v3802_v30  ;;  %v801_v30 = vld [vmem:[#allocation14 + $0x578] sm:$0xff] }
 0x33e   :  { %2440 = vmatpush2.bf16.msra.mxu1 %v3930_v31  ;;  %2398 = vmatprep.subr.bf16.mxu0 %v3795_v32  ;;  %v3748_v31 = vcombine.low %v677_v19, %v681_v20  ;;  %v3876_v32 = vcombine.low %v805_v22, %v809_v23  ;;  %v3869_v34 = vcombine.high %v797_v29, %v801_v30  ;;  %v761_v13 = vld [vmem:[#allocation14 + $0x438] sm:$0xff] }
 0x33f   :  { %2441 = vmatprep.subr.bf16.mxu1 %v3923_v33  ;;  %v3741_v33 = vcombine.high %v669_v26, %v673_v27  ;;  %v753_v19 = vld [vmem:[#allocation14 + $0x3f8] sm:$0xff]  ;;  %v3828_v23 = vcombine.low %v757_v12, %v761_v13 }
 0x340   :  { %v877_v20 = vld [vmem:[#allocation14 + $0x7d8] sm:$0xff] }
 0x341   :  { %2399 = vmatpush2.bf16.msra.mxu0 %v3794_v38  ;;  %v793_v38 = vld [vmem:[#allocation14 + $0x538] sm:$0xff] }
 0x342   :  { %2442 = vmatpush2.bf16.msra.mxu1 %v3922_v39  ;;  %2400 = vmatprep.subr.bf16.mxu0 %v3787_v40  ;;  %v3740_v39 = vcombine.low %v669_v26, %v673_v27  ;;  %v3868_v40 = vcombine.low %v797_v29, %v801_v30  ;;  %v741_v26 = vld [vmem:[#allocation14 + $0x398] sm:$0xff] }
 0x343   :  { %2443 = vmatprep.subr.bf16.mxu1 %v3915_v41  ;;  %v3733_v41 = vcombine.high %v661_v35, %v665_v36  ;;  %v745_v27 = vld [vmem:[#allocation14 + $0x3b8] sm:$0xff] }
 0x344   :  { %v873_v29 = vld [vmem:[#allocation14 + $0x7b8] sm:$0xff] }
 0x345   :  { %2401 = vmatpush2.bf16.msra.mxu0 %v3786_v50  ;;  %v3860_v50 = vcombine.low %v789_v37, %v793_v38 }
 0x346   :  { %2444 = vmatpush2.bf16.msra.mxu1 %v3914_v51  ;;  %2402 = vmatprep.subr.bf16.mxu0 %v3779_v52  ;;  %v3725_v51 = vcombine.high %v653_v42, %v657_v43  ;;  %v3853_v52 = vcombine.high %v781_v48, %v785_v49  ;;  %v729_v42 = vld [vmem:[#allocation14 + $0x338] sm:$0xff] }
 0x347   :  { %2445 = vmatprep.subr.bf16.mxu1 %v3907_v53  ;;  %v645_v53 = vld [vmem:[#allocation14 + $0x98] sm:$0xff] }
 0x348   :  { %v3716_v1 = vcombine.low %v645_v53, %v649_v54  ;;  %v853_v43 = vld [vmem:[#allocation14 + $0x718] sm:$0xff] }
 0x349   :  { %2403 = vmatpush2.bf16.msra.mxu0 %v3778_v58  ;;  %v3852_v58 = vcombine.low %v781_v48, %v785_v49  ;;  %v857_v48 = vld [vmem:[#allocation14 + $0x738] sm:$0xff] }
 0x34a   :  { %2446 = vmatpush2.bf16.msra.mxu1 %v3906_v59  ;;  %2404 = vmatprep.subr.bf16.mxu0 %v3771_v60  ;;  %v3717_v59 = vcombine.high %v645_v53, %v649_v54  ;;  %v3845_v60 = vcombine.high %v773_v55, %v777_v56  ;;  %v721_v53 = vld [vmem:[#allocation14 + $0x2f8] sm:$0xff] }
 0x34b   :  { %2447 = vmatprep.subr.bf16.mxu1 %v3899_v61  ;;  %v637_v61 = vld [vmem:[#allocation14 + $0x58] sm:$0xff] }
 0x34c   :  { %v3708_v14 = vcombine.low %v637_v61, %v641_v62  ;;  %v845_v54 = vld [vmem:[#allocation14 + $0x6d8] sm:$0xff] }
 0x34d   :  { %2405 = vmatpush2.bf16.msra.mxu0 %v3770_v2  ;;  %v3844_v2 = vcombine.low %v773_v55, %v777_v56  ;;  %v849_v55 = vld [vmem:[#allocation14 + $0x6f8] sm:$0xff] }
 0x34e   :  { %2448 = vmatpush2.bf16.msra.mxu1 %v3898_v3  ;;  %2406 = vmatprep.subr.bf16.mxu0 %v3763_v4  ;;  %v3709_v3 = vcombine.high %v637_v61, %v641_v62  ;;  %v3837_v4 = vcombine.high %v765_v63, %v769_v0  ;;  %v713_v61 = vld [vmem:[#allocation14 + $0x2b8] sm:$0xff] }
 0x34f   :  { %2449 = vmatprep.subr.bf16.mxu1 %v3891_v5  ;;  %v629_v5 = vld [vmem:[#allocation14 + $0x18] sm:$0xff] }
 0x350   :  { %v3700_v22 = vcombine.low %v629_v5, %v633_v11  ;;  %v837_v62 = vld [vmem:[#allocation14 + $0x698] sm:$0xff] }
 0x351   :  { %2407 = vmatpush2.bf16.msra.mxu0 %v3762_v15  ;;  %v3836_v15 = vcombine.low %v765_v63, %v769_v0  ;;  %v841_v63 = vld [vmem:[#allocation14 + $0x6b8] sm:$0xff] }
 0x352   :  { %2450 = vmatpush2.bf16.msra.mxu1 %v3890_v16  ;;  %2462 = vmatprep.subr.bf16.mxu0 %v3757_v17  ;;  %v3701_v16 = vcombine.high %v629_v5, %v633_v11  ;;  %v3829_v17 = vcombine.high %v757_v12, %v761_v13  ;;  %v705_v5 = vld [vmem:[#allocation14 + $0x278] sm:$0xff] }
 0x353   :  { %2505 = vmatprep.subr.bf16.mxu1 %v3885_v18  ;;  %v749_v18 = vld [vmem:[#allocation14 + $0x3d8] sm:$0xff] }
 0x354   :  { %2409 = vmatmul.mubr.bf16.vlgmr.msra.gmra.mxu0 %v4748_v46  ;;  %v3820_v30 = vcombine.low %v749_v18, %v753_v19  ;;  %v829_v11 = vld [vmem:[#allocation14 + $0x658] sm:$0xff] }
 0x355   :  { %2452 = vmatmul.mubr.bf16.vlgmr.msra.gmra.mxu1 %v4750_v47  ;;  %2463 = vmatpush1.bf16.msra.mxu0 %v3756_v21  ;;  %v881_v21 = vld [vmem:[#allocation14 + $0x7f8] sm:$0xff] }
 0x356   :  { %2494 = vmatprep.mubr.bf16.mxu0 %v4744_v44  ;;  %2506 = vmatpush1.bf16.msra.mxu1 %v3884_v24  ;;  %v3861_v44 = vcombine.high %v789_v37, %v793_v38  ;;  %v3821_v24 = vcombine.high %v749_v18, %v753_v19  ;;  %v865_v37 = vld [vmem:[#allocation14 + $0x778] sm:$0xff]  ;;  %v3812_v38 = vcombine.low %v741_v26, %v745_v27 }
 0x357   :  { %2537 = vmatprep.mubr.bf16.mxu1 %v4746_v45  ;;  %2464 = vmatprep.subr.bf16.mxu0 %v3749_v25  ;;  %v3732_v45 = vcombine.low %v661_v35, %v665_v36  ;;  %v3949_v25 = vcombine.high %v877_v20, %v881_v21  ;;  %v737_v35 = vld [vmem:[#allocation14 + $0x378] sm:$0xff] }
 0x358   :  { %2507 = vmatprep.subr.bf16.mxu1 %v3877_v28  ;;  %v869_v28 = vld [vmem:[#allocation14 + $0x798] sm:$0xff] }
 0x359   :  { %2465 = vmatpush1.bf16.msra.mxu0 %v3748_v31  ;;  %v3948_v31 = vcombine.low %v877_v20, %v881_v21  ;;  %v861_v36 = vld [vmem:[#allocation14 + $0x758] sm:$0xff] }
 0x35a   :  { %2508 = vmatpush1.bf16.msra.mxu1 %v3876_v32  ;;  %2466 = vmatprep.subr.bf16.mxu0 %v3741_v33  ;;  %v3813_v32 = vcombine.high %v741_v26, %v745_v27  ;;  %v3941_v33 = vcombine.high %v869_v28, %v873_v29  ;;  %v833_v12 = vld [vmem:[#allocation14 + $0x678] sm:$0xff] }
 0x35b   :  { %2509 = vmatprep.subr.bf16.mxu1 %v3869_v34  ;;  %v733_v34 = vld [vmem:[#allocation14 + $0x358] sm:$0xff] }
 0x35c   :  { %v3804_v49 = vcombine.low %v733_v34, %v737_v35  ;;  %v697_v18 = vld [vmem:[#allocation14 + $0x238] sm:$0xff] }
 0x35d   :  { %2467 = vmatpush1.bf16.msra.mxu0 %v3740_v39  ;;  %v3940_v39 = vcombine.low %v869_v28, %v873_v29  ;;  %v821_v19 = vld [vmem:[#allocation14 + $0x618] sm:$0xff] }
 0x35e   :  { %2510 = vmatpush1.bf16.msra.mxu1 %v3868_v40  ;;  %2468 = vmatprep.subr.bf16.mxu0 %v3733_v41  ;;  %v3805_v40 = vcombine.high %v733_v34, %v737_v35  ;;  %v3933_v41 = vcombine.high %v861_v36, %v865_v37  ;;  %v825_v20 = vld [vmem:[#allocation14 + $0x638] sm:$0xff]  ;;  %v4236_v34 = vld [vmem:[#allocation15 + $0x164] ss:$8 sps:$4 sm:$0xff]  }
 0x35f   :  { %2511 = vmatprep.subr.bf16.mxu1 %v3861_v44  ;;  %v725_v44 = vld [vmem:[#allocation14 + $0x318] sm:$0xff]  ;;  %v3892_v26 = vcombine.low %v821_v19, %v825_v20 }
 0x360   :  { %v3796_v56 = vcombine.low %v725_v44, %v729_v42  ;;  %v4215_v27 = vld [vmem:[#allocation15 + $0x74] ss:$8 sps:$4 sm:$0xff]   ;;  %v4213_v29 = vld [vmem:[#allocation15 + $0x70] ss:$8 sps:$4 sm:$0xff]  }
 0x361   :  { %2469 = vmatpush1.bf16.msra.mxu0 %v3732_v45  ;;  %v3932_v45 = vcombine.low %v861_v36, %v865_v37  ;;  %v4230_v28 = vld [vmem:[#allocation15 + $0x174] ss:$8 sps:$4 sm:$0xff]   ;;  %v4216_v37 = vld [vmem:[#allocation15 + $0x60] ss:$8 sps:$4 sm:$0xff]  }
 0x362   :  { %2512 = vmatpush1.bf16.msra.mxu1 %v3860_v50  ;;  %2470 = vmatprep.subr.bf16.mxu0 %v3725_v51  ;;  %v3797_v50 = vcombine.high %v725_v44, %v729_v42  ;;  %v3925_v51 = vcombine.high %v853_v43, %v857_v48  ;;  %v4242_v42 = vld [vmem:[#allocation15 + $0x154] ss:$8 sps:$4 sm:$0xff]  }
 0x363   :  { %2513 = vmatprep.subr.bf16.mxu1 %v3853_v52  ;;  %v717_v52 = vld [vmem:[#allocation14 + $0x2d8] sm:$0xff] }
 0x364   :  { %v3788_v0 = vcombine.low %v717_v52, %v721_v53 }
 0x365   :  { %2471 = vmatpush1.bf16.msra.mxu0 %v3724_v57  ;;  %v3924_v57 = vcombine.low %v853_v43, %v857_v48  ;;  %v4219_v48 = vld [vmem:[#allocation15 + $0x50] ss:$8 sps:$4 sm:$0xff]  }
 0x366   :  { %2514 = vmatpush1.bf16.msra.mxu1 %v3852_v58  ;;  %2472 = vmatprep.subr.bf16.mxu0 %v3717_v59  ;;  %v3789_v58 = vcombine.high %v717_v52, %v721_v53  ;;  %v3917_v59 = vcombine.high %v845_v54, %v849_v55  ;;  %v4248_v52 = vld [vmem:[#allocation15 + $0x144] ss:$8 sps:$4 sm:$0xff]  }
 0x367   :  { %2515 = vmatprep.subr.bf16.mxu1 %v3845_v60  ;;  %v709_v60 = vld [vmem:[#allocation14 + $0x298] sm:$0xff] }
 0x368   :  { %v3780_v13 = vcombine.low %v709_v60, %v713_v61 }
 0x369   :  { %2473 = vmatpush1.bf16.msra.mxu0 %v3716_v1  ;;  %v3916_v1 = vcombine.low %v845_v54, %v849_v55  ;;  %v4222_v55 = vld [vmem:[#allocation15 + $0x40] ss:$8 sps:$4 sm:$0xff]  }
 0x36a   :  { %2516 = vmatpush1.bf16.msra.mxu1 %v3844_v2  ;;  %2474 = vmatprep.subr.bf16.mxu0 %v3709_v3  ;;  %v3781_v2 = vcombine.high %v709_v60, %v713_v61  ;;  %v3909_v3 = vcombine.high %v837_v62, %v841_v63  ;;  %v4254_v60 = vld [vmem:[#allocation15 + $0x134] ss:$8 sps:$4 sm:$0xff]  }
 0x36b   :  { %2517 = vmatprep.subr.bf16.mxu1 %v3837_v4  ;;  %v701_v4 = vld [vmem:[#allocation14 + $0x258] sm:$0xff] }
 0x36c   :  { %v3772_v21 = vcombine.low %v701_v4, %v705_v5 }
 0x36d   :  { %2475 = vmatpush1.bf16.msra.mxu0 %v3708_v14  ;;  %v3908_v14 = vcombine.low %v837_v62, %v841_v63  ;;  %v4225_v62 = vld [vmem:[#allocation15 + $0x30] ss:$8 sps:$4 sm:$0xff]   ;;  %v4233_v63 = vld [vmem:[#allocation15 + $0x24] ss:$8 sps:$4 sm:$0xff]  }
 0x36e   :  { %2518 = vmatpush1.bf16.msra.mxu1 %v3836_v15  ;;  %2476 = vmatprep.subr.bf16.mxu0 %v3701_v16  ;;  %v3773_v15 = vcombine.high %v701_v4, %v705_v5  ;;  %v3901_v16 = vcombine.high %v829_v11, %v833_v12  ;;  %v4258_v4 = vld [vmem:[#allocation15 + $0x120] ss:$8 sps:$4 sm:$0xff]   ;;  %v4266_v5 = vld [vmem:[#allocation15 + $0x114] ss:$8 sps:$4 sm:$0xff]  }
 0x36f   :  { %2519 = vmatprep.subr.bf16.mxu1 %v3829_v17  ;;  %v693_v17 = vld [vmem:[#allocation14 + $0x218] sm:$0xff] }
 0x371   :  { %2477 = vmatpush1.bf16.msra.mxu0 %v3700_v22  ;;  %v3900_v22 = vcombine.low %v829_v11, %v833_v12  ;;  %v4237_v11 = vld [vmem:[#allocation15 + $0x10] ss:$8 sps:$4 sm:$0xff]   ;;  %v4245_v12 = vld [vmem:[#allocation15 + $0x4] ss:$8 sps:$4 sm:$0xff]  }
 0x372   :  { %2520 = vmatpush1.bf16.msra.mxu1 %v3828_v23  ;;  %2478 = vmatprep.subr.bf16.mxu0 %v3821_v24  ;;  %v3765_v23 = vcombine.high %v693_v17, %v697_v18  ;;  %v3893_v24 = vcombine.high %v821_v19, %v825_v20  ;;  %v4249_v19 = vld [vmem:[#allocation15 + $0xf0] ss:$8 sps:$4 sm:$0xff]   ;;  %v4257_v20 = vld [vmem:[#allocation15 + $0xe4] ss:$8 sps:$4 sm:$0xff]  }
 0x373   :  { %2521 = vmatprep.subr.bf16.mxu1 %v3949_v25  ;;  %v3764_v25 = vcombine.low %v693_v17, %v697_v18  ;;  %v4270_v17 = vld [vmem:[#allocation15 + $0x100] ss:$8 sps:$4 sm:$0xff]   ;;  %v4278_v18 = vld [vmem:[#allocation15 + $0x1f4] ss:$8 sps:$4 sm:$0xff]  }
 0x375   :  { %2479 = vmatpush2.bf16.msra.mxu0 %v3820_v30  ;;  %v4769_v30 = vld [vmem:[%s4822_s8] sm:$0xff] }
 0x376   :  { %2522 = vmatpush2.bf16.msra.mxu1 %v3948_v31  ;;  %2480 = vmatprep.subr.bf16.mxu0 %v3813_v32  ;;  %v4218_v31 = vld [vmem:[#allocation15 + $0x64] ss:$8 sps:$4 sm:$0xff]   ;;  %v4228_v32 = vld [vmem:[#allocation15 + $0x170] ss:$8 sps:$4 sm:$0xff]  }
 0x377   :  { %2523 = vmatprep.subr.bf16.mxu1 %v3941_v33  ;;  %v891_v33 = vrot.slane %v4769_v30, %v4728_v7 }
 0x379   :  { %2481 = vmatpush2.bf16.msra.mxu0 %v3812_v38 }
 0x37a   :  { %2524 = vmatpush2.bf16.msra.mxu1 %v3940_v39  ;;  %2482 = vmatprep.subr.bf16.mxu0 %v3805_v40  ;;  %v4221_v40 = vld [vmem:[#allocation15 + $0x54] ss:$8 sps:$4 sm:$0xff]  }
 0x37b   :  { %2525 = vmatprep.subr.bf16.mxu1 %v3933_v41  ;;  %v4234_v41 = vld [vmem:[#allocation15 + $0x160] ss:$8 sps:$4 sm:$0xff]  }
 0x37d   :  { %2483 = vmatpush2.bf16.msra.mxu0 %v3804_v49 }
 0x37e   :  { %2526 = vmatpush2.bf16.msra.mxu1 %v3932_v45  ;;  %2484 = vmatprep.subr.bf16.mxu0 %v3797_v50  ;;  %v4240_v45 = vld [vmem:[#allocation15 + $0x150] ss:$8 sps:$4 sm:$0xff]  }
 0x37f   :  { %2527 = vmatprep.subr.bf16.mxu1 %v3925_v51 }
 0x381   :  { %2485 = vmatpush2.bf16.msra.mxu0 %v3796_v56  ;;  %v4227_v56 = vld [vmem:[#allocation15 + $0x34] ss:$8 sps:$4 sm:$0xff]  }
 0x382   :  { %2528 = vmatpush2.bf16.msra.mxu1 %v3924_v57  ;;  %2486 = vmatprep.subr.bf16.mxu0 %v3789_v58  ;;  %v4246_v57 = vld [vmem:[#allocation15 + $0x140] ss:$8 sps:$4 sm:$0xff]  }
 0x383   :  { %2529 = vmatprep.subr.bf16.mxu1 %v3917_v59 }
 0x385   :  { %2487 = vmatpush2.bf16.msra.mxu0 %v3788_v0  ;;  %v4252_v0 = vld [vmem:[#allocation15 + $0x130] ss:$8 sps:$4 sm:$0xff]  }
 0x386   :  { %2530 = vmatpush2.bf16.msra.mxu1 %v3916_v1  ;;  %2488 = vmatprep.subr.bf16.mxu0 %v3781_v2  ;;  %v4260_v1 = vld [vmem:[#allocation15 + $0x124] ss:$8 sps:$4 sm:$0xff]   ;;  %v4231_v2 = vld [vmem:[#allocation15 + $0x20] ss:$8 sps:$4 sm:$0xff]  }
 0x387   :  { %2531 = vmatprep.subr.bf16.mxu1 %v3909_v3  ;;  %v4239_v3 = vld [vmem:[#allocation15 + $0x14] ss:$8 sps:$4 sm:$0xff]  }
 0x389   :  { %2489 = vmatpush2.bf16.msra.mxu0 %v3780_v13  ;;  %v4264_v13 = vld [vmem:[#allocation15 + $0x110] ss:$8 sps:$4 sm:$0xff]  }
 0x38a   :  { %2532 = vmatpush2.bf16.msra.mxu1 %v3908_v14  ;;  %2490 = vmatprep.subr.bf16.mxu0 %v3773_v15  ;;  %v4272_v14 = vld [vmem:[#allocation15 + $0x104] ss:$8 sps:$4 sm:$0xff]   ;;  %v4243_v15 = vld [vmem:[#allocation15] ss:$8 sps:$4 sm:$0xff]  }
 0x38b   :  { %2533 = vmatprep.subr.bf16.mxu1 %v3901_v16  ;;  %v4251_v16 = vld [vmem:[#allocation15 + $0xf4] ss:$8 sps:$4 sm:$0xff]  }
 0x38d   :  { %2491 = vmatpush2.bf16.msra.mxu0 %v3772_v21  ;;  %v4276_v21 = vld [vmem:[#allocation15 + $0x1f0] ss:$8 sps:$4 sm:$0xff]  }
 0x38e   :  { %2534 = vmatpush2.bf16.msra.mxu1 %v3900_v22  ;;  %2492 = vmatprep.subr.bf16.mxu0 %v3765_v23  ;;  %v4284_v22 = vld [vmem:[#allocation15 + $0x1e4] ss:$8 sps:$4 sm:$0xff]   ;;  %v4255_v23 = vld [vmem:[#allocation15 + $0xe0] ss:$8 sps:$4 sm:$0xff]  }
 0x38f   :  { %2535 = vmatprep.subr.bf16.mxu1 %v3893_v24  ;;  %v4263_v24 = vld [vmem:[#allocation15 + $0xd4] ss:$8 sps:$4 sm:$0xff]  }
 0x391   :  { %2493 = vmatpush2.bf16.msra.mxu0 %v3764_v25  ;;  %v4282_v25 = vld [vmem:[#allocation15 + $0x1e0] ss:$8 sps:$4 sm:$0xff]  }
 0x392   :  { %2536 = vmatpush2.bf16.msra.mxu1 %v3892_v26  ;;  %3454 = vmatprep.subr.bf16.mxu0 %v4215_v27  ;;  %v4290_v26 = vld [vmem:[#allocation15 + $0x1d4] ss:$8 sps:$4 sm:$0xff]   ;;  %v4261_v27 = vld [vmem:[#allocation15 + $0xd0] ss:$8 sps:$4 sm:$0xff]  }
 0x393   :  { %3497 = vmatprep.subr.bf16.mxu1 %v4230_v28  ;;  %v4269_v28 = vld [vmem:[#allocation15 + $0xc4] ss:$8 sps:$4 sm:$0xff]  }
 0x394   :  { %2495 = vmatmul.mubr.bf16.vlgmr.msra.gmra.mxu0 %v4748_v46  ;;  %v4774_v35 = vpop.f32.mrf.mxu0  ;;  %v4776_v36 = vpop.f32.mrf.mxu1 }
 0x395   :  { %2538 = vmatmul.mubr.bf16.vlgmr.msra.gmra.mxu1 %v4750_v47  ;;  %3455 = vmatpush1.bf16.msra.mxu0 %v4213_v29  ;;  %v4224_v47 = vld [vmem:[#allocation15 + $0x44] ss:$8 sps:$4 sm:$0xff]   ;;  %v4288_v29 = vld [vmem:[#allocation15 + $0x1d0] ss:$8 sps:$4 sm:$0xff]  }
 0x396   :  { %v2240_v38 = vpop.f32.mrf.mxu0  ;;  %v2283_v39 = vpop.f32.mrf.mxu1  ;;  %3456 = vmatprep.subr.bf16.mxu0 %v4218_v31  ;;  %3498 = vmatpush1.bf16.msra.mxu1 %v4228_v32  ;;  %v4296_v31 = vld [vmem:[#allocation15 + $0x1c4] ss:$8 sps:$4 sm:$0xff]   ;;  %v4267_v32 = vld [vmem:[#allocation15 + $0xc0] ss:$8 sps:$4 sm:$0xff]  }
 0x397   :  { %v2241_v44 = vadd.f32 %v2240_v38, %v891_v33  ;;  %3499 = vmatprep.subr.bf16.mxu1 %v4236_v34  ;;  %v4294_v34 = vld [vmem:[#allocation15 + $0x1c0] ss:$8 sps:$4 sm:$0xff]   ;;  %v4273_v38 = vld [vmem:[#allocation15 + $0xb0] ss:$8 sps:$4 sm:$0xff]  }
 0x398   :  { %v4779_v43 = vpop.f32.mrf.mxu0  ;;  %v4781_v46 = vpop.f32.mrf.mxu1 }
 0x399   :  { %3457 = vmatpush1.bf16.msra.mxu0 %v4216_v37  ;;  %v2284_v50 = vadd.f32 %v2283_v39, %v2241_v44  ;;  %v4299_v37 = vld [vmem:[#allocation15 + $0x1b4] ss:$8 sps:$4 sm:$0xff]   ;;  %v4281_v39 = vld [vmem:[#allocation15 + $0xa4] ss:$8 sps:$4 sm:$0xff]   ;;  %v887_v44 = vrot.slane %v4769_v30, %v4732_v9 }
 0x39a   :  { %v2244_v49 = vpop.f32.mrf.mxu0  ;;  %3458 = vmatprep.subr.bf16.mxu0 %v4221_v40  ;;  %3500 = vmatpush1.bf16.msra.mxu1 %v4234_v41  ;;  %v2287_v53 = vpop.f32.mrf.mxu1  ;;  %v4297_v40 = vld [vmem:[#allocation15 + $0x1b0] ss:$8 sps:$4 sm:$0xff]   ;;  %v4302_v41 = vld [vmem:[#allocation15 + $0x1a4] ss:$8 sps:$4 sm:$0xff]  }
 0x39b   :  { %v2245_v51 = vadd.f32 %v2244_v49, %v891_v33  ;;  %3501 = vmatprep.subr.bf16.mxu1 %v4242_v42  ;;  %v2549_v58 = vmax.f32 %v2284_v50, 0.0  ;;  %v4275_v33 = vld [vmem:[#allocation15 + $0xb4] ss:$8 sps:$4 sm:$0xff]   ;;  %v4279_v42 = vld [vmem:[#allocation15 + $0xa0] ss:$8 sps:$4 sm:$0xff]   ;;  %v2239_v50 = vadd.f32 %v4774_v35, %v887_v44 }
 0x39c   :  { %v4287_v49 = vld [vmem:[#allocation15 + $0x94] ss:$8 sps:$4 sm:$0xff]  }
 0x39d   :  { %v2288_v54 = vadd.f32 %v2287_v53, %v2245_v51  ;;  %3459 = vmatpush1.bf16.msra.mxu0 %v4219_v48  ;;  %v2243_v48 = vadd.f32 %v4779_v43, %v887_v44  ;;  %v4285_v51 = vld [vmem:[#allocation15 + $0x90] ss:$8 sps:$4 sm:$0xff]   ;;  %v4293_v53 = vld [vmem:[#allocation15 + $0x84] ss:$8 sps:$4 sm:$0xff]   ;;  %v2282_v43 = vadd.f32 %v4776_v36, %v2239_v50  ;;  %v4359_v35 = vld [vmem:[#allocation15 + $0x374] ss:$8 sps:$4 sm:$0xff]   ;;  %v899_v36 = vrot.slane %v4769_v30, %v362_v8 }
 0x39e   :  { %3460 = vmatprep.subr.bf16.mxu0 %v4224_v47  ;;  %3502 = vmatpush1.bf16.msra.mxu1 %v4240_v45  ;;  %v4300_v47 = vld [vmem:[#allocation15 + $0x1a0] ss:$8 sps:$4 sm:$0xff]   ;;  %v4305_v45 = vld [vmem:[#allocation15 + $0x194] ss:$8 sps:$4 sm:$0xff]   ;;  %v4315_v8 = vld [vmem:[#allocation15 + $0x250] ss:$8 sps:$4 sm:$0xff]  }
 0x39f   :  { %v2557_v59 = vmax.f32 %v2288_v54, 0.0  ;;  %3503 = vmatprep.subr.bf16.mxu1 %v4248_v52  ;;  %v2286_v52 = vadd.f32 %v4781_v46, %v2243_v48  ;;  %v4303_v54 = vld [vmem:[#allocation15 + $0x190] ss:$8 sps:$4 sm:$0xff]   ;;  %v4332_v48 = vld [vmem:[#allocation15 + $0x204] ss:$8 sps:$4 sm:$0xff]  }
 0x3a0   :  { %v4309_v46 = vld [vmem:[#allocation15 + $0x270] ss:$8 sps:$4 sm:$0xff]   ;;  %v4335_v50 = vld [vmem:[#allocation15 + $0x2f4] ss:$8 sps:$4 sm:$0xff]  }
 0x3a1   :  { %v4103_v61 = vpack.c.bf16 %v2557_v59, %v2549_v58  ;;  %3461 = vmatpush1.bf16.msra.mxu0 %v4222_v55  ;;  %v4308_v55 = vld [vmem:[#allocation15 + $0x184] ss:$8 sps:$4 sm:$0xff]   ;;  %v4306_v58 = vld [vmem:[#allocation15 + $0x180] ss:$8 sps:$4 sm:$0xff]   ;;  %v4311_v59 = vld [vmem:[#allocation15 + $0x274] ss:$8 sps:$4 sm:$0xff]  }
 0x3a2   :  { %3462 = vmatprep.subr.bf16.mxu0 %v4227_v56  ;;  %3504 = vmatpush1.bf16.msra.mxu1 %v4246_v57  ;;  %v4291_v56 = vld [vmem:[#allocation15 + $0x80] ss:$8 sps:$4 sm:$0xff]   ;;  %v2556_v57 = vmax.f32 %v2286_v52, 0.0  ;;  %v4327_v44 = vld [vmem:[#allocation15 + $0x210] ss:$8 sps:$4 sm:$0xff]  }
 0x3a3   :  { %3486 = vmatprep.mubr.bf16.mxu0 %v4103_v61  ;;  %3505 = vmatprep.subr.bf16.mxu1 %v4254_v60  ;;  %v2548_v60 = vmax.f32 %v2282_v43, 0.0  ;;  %v4333_v52 = vld [vmem:[#allocation15 + $0x2f0] ss:$8 sps:$4 sm:$0xff]   ;;  %v4336_v43 = vld [vmem:[#allocation15 + $0x2e0] ss:$8 sps:$4 sm:$0xff]  }
 0x3a5   :  { %3463 = vmatpush1.bf16.msra.mxu0 %v4225_v62  ;;  %v4102_v61 = vpack.c.bf16 %v2556_v57, %v2548_v60  ;;  %v4314_v62 = vld [vmem:[#allocation15 + $0x264] ss:$8 sps:$4 sm:$0xff]   ;;  %v4341_v57 = vld [vmem:[#allocation15 + $0x2d4] ss:$8 sps:$4 sm:$0xff]  }
 0x3a6   :  { %3464 = vmatprep.subr.bf16.mxu0 %v4233_v63  ;;  %3506 = vmatpush1.bf16.msra.mxu1 %v4252_v0  ;;  %v895_v63 = vrot.slane %v4769_v30, %v358_v10  ;;  %v4344_v60 = vld [vmem:[#allocation15 + $0x2c4] ss:$8 sps:$4 sm:$0xff]  }
 0x3a7   :  { %3507 = vmatprep.subr.bf16.mxu1 %v4260_v1 }
 0x3a9   :  { %3465 = vmatpush1.bf16.msra.mxu0 %v4231_v2  ;;  %v4312_v2 = vld [vmem:[#allocation15 + $0x260] ss:$8 sps:$4 sm:$0xff]  }
 0x3aa   :  { %3466 = vmatprep.subr.bf16.mxu0 %v4239_v3  ;;  %3508 = vmatpush1.bf16.msra.mxu1 %v4258_v4 }
 0x3ab   :  { %3509 = vmatprep.subr.bf16.mxu1 %v4266_v5  ;;  %v4317_v5 = vld [vmem:[#allocation15 + $0x254] ss:$8 sps:$4 sm:$0xff]  }
 0x3ad   :  { %3467 = vmatpush1.bf16.msra.mxu0 %v4237_v11 }
 0x3ae   :  { %3468 = vmatprep.subr.bf16.mxu0 %v4245_v12  ;;  %3510 = vmatpush1.bf16.msra.mxu1 %v4264_v13 }
 0x3af   :  { %3511 = vmatprep.subr.bf16.mxu1 %v4272_v14 }
 0x3b1   :  { %3469 = vmatpush1.bf16.msra.mxu0 %v4243_v15 }
 0x3b2   :  { %3470 = vmatprep.subr.bf16.mxu0 %v4251_v16  ;;  %3512 = vmatpush1.bf16.msra.mxu1 %v4270_v17  ;;  %v4320_v17 = vld [vmem:[#allocation15 + $0x244] ss:$8 sps:$4 sm:$0xff]  }
 0x3b3   :  { %3513 = vmatprep.subr.bf16.mxu1 %v4278_v18 }
 0x3b5   :  { %3471 = vmatpush2.bf16.msra.mxu0 %v4249_v19 }
 0x3b6   :  { %3472 = vmatprep.subr.bf16.mxu0 %v4257_v20  ;;  %3514 = vmatpush2.bf16.msra.mxu1 %v4276_v21 }
 0x3b7   :  { %3515 = vmatprep.subr.bf16.mxu1 %v4284_v22 }
 0x3b9   :  { %3473 = vmatpush2.bf16.msra.mxu0 %v4255_v23  ;;  %v4318_v23 = vld [vmem:[#allocation15 + $0x240] ss:$8 sps:$4 sm:$0xff]  }
 0x3ba   :  { %3474 = vmatprep.subr.bf16.mxu0 %v4263_v24  ;;  %3516 = vmatpush2.bf16.msra.mxu1 %v4282_v25  ;;  %v4323_v25 = vld [vmem:[#allocation15 + $0x234] ss:$8 sps:$4 sm:$0xff]  }
 0x3bb   :  { %3517 = vmatprep.subr.bf16.mxu1 %v4290_v26 }
 0x3bd   :  { %3475 = vmatpush2.bf16.msra.mxu0 %v4261_v27 }
 0x3be   :  { %3476 = vmatprep.subr.bf16.mxu0 %v4269_v28  ;;  %3518 = vmatpush2.bf16.msra.mxu1 %v4288_v29 }
 0x3bf   :  { %3519 = vmatprep.subr.bf16.mxu1 %v4296_v31  ;;  %v4321_v31 = vld [vmem:[#allocation15 + $0x230] ss:$8 sps:$4 sm:$0xff]  }
 0x3c1   :  { %3477 = vmatpush2.bf16.msra.mxu0 %v4267_v32  ;;  %v4357_v32 = vld [vmem:[#allocation15 + $0x370] ss:$8 sps:$4 sm:$0xff]  }
 0x3c2   :  { %3478 = vmatprep.subr.bf16.mxu0 %v4275_v33  ;;  %3520 = vmatpush2.bf16.msra.mxu1 %v4294_v34  ;;  %v4326_v34 = vld [vmem:[#allocation15 + $0x224] ss:$8 sps:$4 sm:$0xff]  }
 0x3c3   :  { %3521 = vmatprep.subr.bf16.mxu1 %v4299_v37  ;;  %v4362_v37 = vld [vmem:[#allocation15 + $0x364] ss:$8 sps:$4 sm:$0xff]  }
 0x3c5   :  { %3479 = vmatpush2.bf16.msra.mxu0 %v4273_v38  ;;  %v4324_v38 = vld [vmem:[#allocation15 + $0x220] ss:$8 sps:$4 sm:$0xff]  }
 0x3c6   :  { %3480 = vmatprep.subr.bf16.mxu0 %v4281_v39  ;;  %3522 = vmatpush2.bf16.msra.mxu1 %v4297_v40  ;;  %v4360_v39 = vld [vmem:[#allocation15 + $0x360] ss:$8 sps:$4 sm:$0xff]   ;;  %v4329_v40 = vld [vmem:[#allocation15 + $0x214] ss:$8 sps:$4 sm:$0xff]  }
 0x3c7   :  { %3523 = vmatprep.subr.bf16.mxu1 %v4302_v41  ;;  %v4365_v41 = vld [vmem:[#allocation15 + $0x354] ss:$8 sps:$4 sm:$0xff]  }
 0x3c9   :  { %3481 = vmatpush2.bf16.msra.mxu0 %v4279_v42  ;;  %v4363_v42 = vld [vmem:[#allocation15 + $0x350] ss:$8 sps:$4 sm:$0xff]  }
 0x3ca   :  { %3482 = vmatprep.subr.bf16.mxu0 %v4287_v49  ;;  %3524 = vmatpush2.bf16.msra.mxu1 %v4300_v47  ;;  %v4368_v49 = vld [vmem:[#allocation15 + $0x344] ss:$8 sps:$4 sm:$0xff]   ;;  %v4330_v47 = vld [vmem:[#allocation15 + $0x200] ss:$8 sps:$4 sm:$0xff]  }
 0x3cb   :  { %3525 = vmatprep.subr.bf16.mxu1 %v4305_v45  ;;  %v4366_v45 = vld [vmem:[#allocation15 + $0x340] ss:$8 sps:$4 sm:$0xff]  }
 0x3cd   :  { %3483 = vmatpush2.bf16.msra.mxu0 %v4285_v51  ;;  %v4371_v51 = vld [vmem:[#allocation15 + $0x334] ss:$8 sps:$4 sm:$0xff]  }
 0x3ce   :  { %3484 = vmatprep.subr.bf16.mxu0 %v4293_v53  ;;  %3526 = vmatpush2.bf16.msra.mxu1 %v4303_v54  ;;  %v4369_v53 = vld [vmem:[#allocation15 + $0x330] ss:$8 sps:$4 sm:$0xff]   ;;  %v4338_v54 = vld [vmem:[#allocation15 + $0x2e4] ss:$8 sps:$4 sm:$0xff]  }
 0x3cf   :  { %3527 = vmatprep.subr.bf16.mxu1 %v4308_v55  ;;  %v4374_v55 = vld [vmem:[#allocation15 + $0x324] ss:$8 sps:$4 sm:$0xff]  }
 0x3d1   :  { %3485 = vmatpush2.bf16.msra.mxu0 %v4291_v56  ;;  %v4372_v56 = vld [vmem:[#allocation15 + $0x320] ss:$8 sps:$4 sm:$0xff]  }
 0x3d2   :  { %3528 = vmatpush2.bf16.msra.mxu1 %v4306_v58  ;;  %3540 = vmatprep.subr.bf16.mxu0 %v4311_v59  ;;  %v4377_v58 = vld [vmem:[#allocation15 + $0x314] ss:$8 sps:$4 sm:$0xff]   ;;  %v4339_v59 = vld [vmem:[#allocation15 + $0x2d0] ss:$8 sps:$4 sm:$0xff]  }
 0x3d3   :  { %3583 = vmatprep.subr.bf16.mxu1 %v4359_v35  ;;  %v4375_v35 = vld [vmem:[#allocation15 + $0x310] ss:$8 sps:$4 sm:$0xff]  }
 0x3d4   :  { %v2324_v0 = vpop.f32.mrf.mxu0  ;;  %v2367_v1 = vpop.f32.mrf.mxu1  ;;  %3487 = vmatmul.mubr.bf16.vlgmr.msra.gmra.mxu0 %v4102_v61  ;;  %v4342_v61 = vld [vmem:[#allocation15 + $0x2c0] ss:$8 sps:$4 sm:$0xff]  }
 0x3d5   :  { %3541 = vmatpush1.bf16.msra.mxu0 %v4309_v46  ;;  %v2325_v12 = vadd.f32 %v2324_v0, %v895_v63  ;;  %v4380_v46 = vld [vmem:[#allocation15 + $0x304] ss:$8 sps:$4 sm:$0xff]   ;;  %v4345_v0 = vld [vmem:[#allocation15 + $0x2b0] ss:$8 sps:$4 sm:$0xff]  }
 0x3d6   :  { %v2326_v3 = vpop.f32.mrf.mxu0  ;;  %v2369_v4 = vpop.f32.mrf.mxu1  ;;  %3542 = vmatprep.subr.bf16.mxu0 %v4314_v62  ;;  %v4378_v62 = vld [vmem:[#allocation15 + $0x300] ss:$8 sps:$4 sm:$0xff]  }
 0x3d7   :  { %v2327_v11 = vadd.f32 %v2326_v3, %v899_v36  ;;  %v2368_v20 = vadd.f32 %v2367_v1, %v2325_v12  ;;  %v4381_v1 = vld [vmem:[#allocation15 + $0x3f0] ss:$8 sps:$4 sm:$0xff]   ;;  %v4386_v3 = vld [vmem:[#allocation15 + $0x3e4] ss:$8 sps:$4 sm:$0xff]   ;;  %v4389_v12 = vld [vmem:[#allocation15 + $0x3d4] ss:$8 sps:$4 sm:$0xff]  }
 0x3d8   :  { %v2328_v13 = vpop.f32.mrf.mxu0  ;;  %v2371_v14 = vpop.f32.mrf.mxu1 }
 0x3d9   :  { %v2329_v15 = vadd.f32 %v2328_v13, %v895_v63  ;;  %3543 = vmatpush1.bf16.msra.mxu0 %v4312_v2  ;;  %v2370_v10 = vadd.f32 %v2369_v4, %v2327_v11  ;;  %v2550_v28 = vmax.f32 %v2368_v20, 0.0  ;;  %v4383_v63 = vld [vmem:[#allocation15 + $0x3f4] ss:$8 sps:$4 sm:$0xff]   ;;  %v4350_v2 = vld [vmem:[#allocation15 + $0x2a4] ss:$8 sps:$4 sm:$0xff]  }
 0x3da   :  { %v2330_v16 = vpop.f32.mrf.mxu0  ;;  %3544 = vmatprep.subr.bf16.mxu0 %v4317_v5  ;;  %v2373_v21 = vpop.f32.mrf.mxu1  ;;  %v4348_v4 = vld [vmem:[#allocation15 + $0x2a0] ss:$8 sps:$4 sm:$0xff]   ;;  %v4353_v11 = vld [vmem:[#allocation15 + $0x294] ss:$8 sps:$4 sm:$0xff]   ;;  %v4351_v13 = vld [vmem:[#allocation15 + $0x290] ss:$8 sps:$4 sm:$0xff]  }
 0x3db   :  { %v2372_v18 = vadd.f32 %v2371_v14, %v2329_v15  ;;  %v2331_v19 = vadd.f32 %v2330_v16, %v899_v36  ;;  %v2551_v26 = vmax.f32 %v2370_v10, 0.0  ;;  %v4347_v36 = vld [vmem:[#allocation15 + $0x2b4] ss:$8 sps:$4 sm:$0xff]   ;;  %v4384_v5 = vld [vmem:[#allocation15 + $0x3e0] ss:$8 sps:$4 sm:$0xff]  }
 0x3dc   :  { %v4387_v14 = vld [vmem:[#allocation15 + $0x3d0] ss:$8 sps:$4 sm:$0xff]   ;;  %v4356_v15 = vld [vmem:[#allocation15 + $0x284] ss:$8 sps:$4 sm:$0xff]   ;;  %v4354_v16 = vld [vmem:[#allocation15 + $0x280] ss:$8 sps:$4 sm:$0xff]  }
 0x3dd   :  { %v2374_v22 = vadd.f32 %v2373_v21, %v2331_v19  ;;  %3545 = vmatpush1.bf16.msra.mxu0 %v4315_v8  ;;  %v2558_v24 = vmax.f32 %v2372_v18, 0.0  ;;  %v4392_v8 = vld [vmem:[#allocation15 + $0x3c4] ss:$8 sps:$4 sm:$0xff]   ;;  %v4395_v10 = vld [vmem:[#allocation15 + $0x3b4] ss:$8 sps:$4 sm:$0xff]   ;;  %v906_v18 = vsub.s32 5, %v4725_v6 }
 0x3de   :  { %3546 = vmatprep.subr.bf16.mxu0 %v4320_v17  ;;  %v4390_v17 = vld [vmem:[#allocation15 + $0x3c0] ss:$8 sps:$4 sm:$0xff]   ;;  %v902_v19 = vsub.s32 4, %v4725_v6  ;;  %v4393_v20 = vld [vmem:[#allocation15 + $0x3b0] ss:$8 sps:$4 sm:$0xff]  }
 0x3df   :  { %v2559_v27 = vmax.f32 %v2374_v22, 0.0  ;;  %v4104_v33 = vpack.c.bf16 %v2558_v24, %v2550_v28  ;;  %v4398_v21 = vld [vmem:[#allocation15 + $0x3a4] ss:$8 sps:$4 sm:$0xff]   ;;  %v907_v22 = vrot.slane %v4769_v30, %v906_v18  ;;  %v4401_v28 = vld [vmem:[#allocation15 + $0x394] ss:$8 sps:$4 sm:$0xff]  }
 0x3e1   :  { %v4105_v29 = vpack.c.bf16 %v2559_v27, %v2551_v26  ;;  %3547 = vmatpush1.bf16.msra.mxu0 %v4318_v23  ;;  %v903_v23 = vrot.slane %v4769_v30, %v902_v19  ;;  %v4396_v26 = vld [vmem:[#allocation15 + $0x3a0] ss:$8 sps:$4 sm:$0xff]   ;;  %v2762_v19 = vld [vmem:[%s4824_s10] sm:$0x3]  ;;  %s4616_s10 = smov [#allocation17]  }
 0x3e2   :  { %3548 = vmatprep.subr.bf16.mxu0 %v4323_v25  ;;  %s3635_s26 = sshll.u32 %s4616_s10, 4  ;;  %s3636_s26 = int_to_ptr.vmem [resolvable:$true] %s3635_s26 }
 0x3e3   :  { %3529 = vmatprep.mubr.bf16.mxu1 %v4105_v29  ;;  %s4565_s27 = scalar_lea.vmem %s3636_s26, 512  ;;  %p4570_p13 = scmp.lt.s32.totalorder %s3636_s26, %s3636_s26 }
 0x3e4   :  { %3530 = vmatmul.mubr.bf16.vlgmr.msra.gmra.mxu1 %v4104_v33  ;;  %p4566_p12 = scmp.ne.s32.totalorder %s3636_s26, %s4565_s27  ;;  %p4571_p0 = scmp.lt.s32.totalorder %s4565_s27, %s4565_s27 }
 0x3e5   :  { %3549 = vmatpush1.bf16.msra.mxu0 %v4321_v31  ;;  %3584 = vmatpush1.bf16.msra.mxu1 %v4357_v32 }
 0x3e6   :  { %3550 = vmatprep.subr.bf16.mxu0 %v4326_v34  ;;  %3585 = vmatprep.subr.bf16.mxu1 %v4362_v37  ;;  %p4572_p1 = por %p4571_p0, %p4570_p13 }
 0x3e8   :  { %p4573_p2 = pnand %p4572_p1, %p4566_p12 }
 0x3e9   :  { %3551 = vmatpush1.bf16.msra.mxu0 %v4324_v38  ;;  %3586 = vmatpush1.bf16.msra.mxu1 %v4360_v39  ;;  %v4399_v38 = vld [vmem:[#allocation15 + $0x390] ss:$8 sps:$4 sm:$0xff]  }
 0x3ea   :  { %3552 = vmatprep.subr.bf16.mxu0 %v4329_v40  ;;  %3587 = vmatprep.subr.bf16.mxu1 %v4365_v41  ;;  %v4404_v40 = vld [vmem:[#allocation15 + $0x384] ss:$8 sps:$4 sm:$0xff]  }
 0x3ed   :  { %3553 = vmatpush1.bf16.msra.mxu0 %v4327_v44  ;;  %3588 = vmatpush1.bf16.msra.mxu1 %v4363_v42 }
 0x3ee   :  { %3554 = vmatprep.subr.bf16.mxu0 %v4332_v48  ;;  %3589 = vmatprep.subr.bf16.mxu1 %v4368_v49 }
 0x3f1   :  { %3555 = vmatpush1.bf16.msra.mxu0 %v4330_v47  ;;  %3590 = vmatpush1.bf16.msra.mxu1 %v4366_v45  ;;  %v4402_v45 = vld [vmem:[#allocation15 + $0x380] ss:$8 sps:$4 sm:$0xff]  }
 0x3f2   :  { %3556 = vmatprep.subr.bf16.mxu0 %v4335_v50  ;;  %3591 = vmatprep.subr.bf16.mxu1 %v4371_v51 }
 0x3f5   :  { %3557 = vmatpush2.bf16.msra.mxu0 %v4333_v52  ;;  %3592 = vmatpush1.bf16.msra.mxu1 %v4369_v53 }
 0x3f6   :  { %3558 = vmatprep.subr.bf16.mxu0 %v4338_v54  ;;  %3593 = vmatprep.subr.bf16.mxu1 %v4374_v55 }
 0x3f9   :  { %3559 = vmatpush2.bf16.msra.mxu0 %v4336_v43  ;;  %3594 = vmatpush1.bf16.msra.mxu1 %v4372_v56  ;;  %v914_v43 = vsub.s32 7, %v4725_v6  ;;  %v910_v56 = vsub.s32 6, %v4725_v6 }
 0x3fa   :  { %3560 = vmatprep.subr.bf16.mxu0 %v4341_v57  ;;  %3595 = vmatprep.subr.bf16.mxu1 %v4377_v58 }
 0x3fb   :  { %v915_v57 = vrot.slane %v4769_v30, %v914_v43  ;;  %v911_v58 = vrot.slane %v4769_v30, %v910_v56 }
 0x3fd   :  { %3561 = vmatpush2.bf16.msra.mxu0 %v4339_v59  ;;  %3596 = vmatpush1.bf16.msra.mxu1 %v4375_v35 }
 0x3fe   :  { %3562 = vmatprep.subr.bf16.mxu0 %v4344_v60  ;;  %3597 = vmatprep.subr.bf16.mxu1 %v4380_v46 }
 0x401   :  { %3563 = vmatpush2.bf16.msra.mxu0 %v4342_v61  ;;  %3598 = vmatpush1.bf16.msra.mxu1 %v4378_v62 }
 0x402   :  { %3564 = vmatprep.subr.bf16.mxu0 %v4347_v36  ;;  %3599 = vmatprep.subr.bf16.mxu1 %v4383_v63 }
 0x405   :  { %3565 = vmatpush2.bf16.msra.mxu0 %v4345_v0  ;;  %3600 = vmatpush2.bf16.msra.mxu1 %v4381_v1 }
 0x406   :  { %3566 = vmatprep.subr.bf16.mxu0 %v4350_v2  ;;  %3601 = vmatprep.subr.bf16.mxu1 %v4386_v3 }
 0x409   :  { %3567 = vmatpush2.bf16.msra.mxu0 %v4348_v4  ;;  %3602 = vmatpush2.bf16.msra.mxu1 %v4384_v5 }
 0x40a   :  { %3568 = vmatprep.subr.bf16.mxu0 %v4353_v11  ;;  %3603 = vmatprep.subr.bf16.mxu1 %v4389_v12 }
 0x40d   :  { %3569 = vmatpush2.bf16.msra.mxu0 %v4351_v13  ;;  %3604 = vmatpush2.bf16.msra.mxu1 %v4387_v14 }
 0x40e   :  { %3570 = vmatprep.subr.bf16.mxu0 %v4356_v15  ;;  %3605 = vmatprep.subr.bf16.mxu1 %v4392_v8 }
 0x411   :  { %3571 = vmatpush2.bf16.msra.mxu0 %v4354_v16  ;;  %3606 = vmatpush2.bf16.msra.mxu1 %v4390_v17 }
 0x412   :  { %3607 = vmatprep.subr.bf16.mxu1 %v4395_v10 }
 0x414   :  { %v2410_v24 = vpop.f32.mrf.mxu0 }
 0x415   :  { %v2453_v25 = vpop.f32.mrf.mxu1  ;;  %3608 = vmatpush2.bf16.msra.mxu1 %v4393_v20  ;;  %v2411_v32 = vadd.f32 %v2410_v24, %v903_v23  ;;  %v2771_v24 = vrot.slane %v2762_v19, %v4728_v7 }
 0x416   :  { %v2412_v27 = vpop.f32.mrf.mxu0  ;;  %3609 = vmatprep.subr.bf16.mxu1 %v4398_v21 }
 0x417   :  { %v2413_v29 = vadd.f32 %v2412_v27, %v907_v22  ;;  %v2455_v31 = vpop.f32.mrf.mxu1  ;;  %v2454_v48 = vadd.f32 %v2453_v25, %v2411_v32 }
 0x418   :  { %v2414_v33 = vpop.f32.mrf.mxu0 }
 0x419   :  { %v2415_v34 = vadd.f32 %v2414_v33, %v903_v23  ;;  %v2457_v37 = vpop.f32.mrf.mxu1  ;;  %3610 = vmatpush2.bf16.msra.mxu1 %v4396_v26  ;;  %v2456_v41 = vadd.f32 %v2455_v31, %v2413_v29  ;;  %v2552_v53 = vmax.f32 %v2454_v48, 0.0  ;;  %v2767_v23 = vrot.slane %v2762_v19, %v4732_v9 }
 0x41a   :  { %v2416_v39 = vpop.f32.mrf.mxu0  ;;  %3611 = vmatprep.subr.bf16.mxu1 %v4401_v28 }
 0x41b   :  { %v2458_v44 = vadd.f32 %v2457_v37, %v2415_v34  ;;  %v2417_v42 = vadd.f32 %v2416_v39, %v907_v22  ;;  %v2459_v49 = vpop.f32.mrf.mxu1  ;;  %v2553_v51 = vmax.f32 %v2456_v41, 0.0 }
 0x41d   :  { %v2460_v47 = vadd.f32 %v2459_v49, %v2417_v42  ;;  %3612 = vmatpush2.bf16.msra.mxu1 %v4399_v38  ;;  %v2560_v50 = vmax.f32 %v2458_v44, 0.0 }
 0x41e   :  { %3613 = vmatprep.subr.bf16.mxu1 %v4404_v40 }
 0x41f   :  { %v2561_v52 = vmax.f32 %v2460_v47, 0.0  ;;  %v4106_v55 = vpack.c.bf16 %v2560_v50, %v2552_v53 }
 0x421   :  { %v4107_v54 = vpack.c.bf16 %v2561_v52, %v2553_v51  ;;  %3614 = vmatpush2.bf16.msra.mxu1 %v4402_v45 }
 0x423   :  { %3572 = vmatprep.mubr.bf16.mxu0 %v4107_v54 }
 0x424   :  { %3573 = vmatmul.mubr.bf16.vlgmr.msra.gmra.mxu0 %v4106_v55 }
 0x454   :  { %v2496_v59 = vpop.f32.mrf.mxu0 }
 0x455   :  { %v2539_v35 = vpop.f32.mrf.mxu1  ;;  %v2497_v62 = vadd.f32 %v2496_v59, %v911_v58 }
 0x456   :  { %v2498_v60 = vpop.f32.mrf.mxu0 }
 0x457   :  { %v2499_v46 = vadd.f32 %v2498_v60, %v915_v57  ;;  %v2541_v61 = vpop.f32.mrf.mxu1  ;;  %v2540_v5 = vadd.f32 %v2539_v35, %v2497_v62 }
 0x458   :  { %v2500_v36 = vpop.f32.mrf.mxu0 }
 0x459   :  { %v2501_v63 = vadd.f32 %v2500_v36, %v911_v58  ;;  %v2543_v0 = vpop.f32.mrf.mxu1  ;;  %v2542_v2 = vadd.f32 %v2541_v61, %v2499_v46  ;;  %v2554_v30 = vmax.f32 %v2540_v5, 0.0 }
 0x45a   :  { %v2502_v1 = vpop.f32.mrf.mxu0 }
 0x45b   :  { %v2544_v3 = vadd.f32 %v2543_v0, %v2501_v63  ;;  %v2503_v4 = vadd.f32 %v2502_v1, %v915_v57  ;;  %v2545_v11 = vpop.f32.mrf.mxu1  ;;  %v2555_v13 = vmax.f32 %v2542_v2, 0.0 }
 0x45d   :  { %v2546_v6 = vadd.f32 %v2545_v11, %v2503_v4  ;;  %v2562_v12 = vmax.f32 %v2544_v3, 0.0 }
 0x45f   :  { %v2563_v14 = vmax.f32 %v2546_v6, 0.0  ;;  %v4108_v8 = vpack.c.bf16 %v2562_v12, %v2554_v30 }
 0x461   :  { %v4109_v15 = vpack.c.bf16 %v2563_v14, %v2555_v13 }
 0x463   :  { %3615 = vmatprep.mubr.bf16.mxu1 %v4109_v15 }
 0x464   :  { %3616 = vmatmul.mubr.bf16.vlgmr.msra.gmra.mxu1 %v4108_v8 }
 0x494   :  { %v3488_v16 = vpop.f32.mrf.mxu0 }
 0x495   :  { %v3489_v27 = vadd.f32 %v3488_v16, %v2767_v23 }
 0x496   :  { %v3490_v17 = vpop.f32.mrf.mxu0 }
 0x497   :  { %v3491_v28 = vadd.f32 %v3490_v17, %v2771_v24 }
 0x498   :  { %v3492_v10 = vpop.f32.mrf.mxu0 }
 0x499   :  { %v3493_v33 = vadd.f32 %v3492_v10, %v2767_v23 }
 0x49a   :  { %v3494_v20 = vpop.f32.mrf.mxu0 }
 0x49b   :  { %v3495_v39 = vadd.f32 %v3494_v20, %v2771_v24 }
 0x4a4   :  { %v3531_v18 = vpop.f32.mrf.mxu1 }
 0x4a5   :  { %v3532_v29 = vadd.f32 %v3531_v18, %v3489_v27 }
 0x4a6   :  { %v3533_v21 = vpop.f32.mrf.mxu1 }
 0x4a7   :  { %v3534_v34 = vadd.f32 %v3533_v21, %v3491_v28 }
 0x4a8   :  { %v3535_v25 = vpop.f32.mrf.mxu1 }
 0x4a9   :  { %v3536_v40 = vadd.f32 %v3535_v25, %v3493_v33 }
 0x4aa   :  { %v3537_v31 = vpop.f32.mrf.mxu1 }
 0x4ab   :  { %v3538_v9 = vadd.f32 %v3537_v31, %v3495_v39 }
 0x4e4   :  { %v3574_v22 = vpop.f32.mrf.mxu0 }
 0x4e5   :  { %v3575_v37 = vadd.f32 %v3574_v22, %v3532_v29 }
 0x4e6   :  { %v3576_v26 = vpop.f32.mrf.mxu0 }
 0x4e7   :  { %v3577_v41 = vadd.f32 %v3576_v26, %v3534_v34 }
 0x4e8   :  { %v3578_v32 = vpop.f32.mrf.mxu0 }
 0x4e9   :  { %v3579_v49 = vadd.f32 %v3578_v32, %v3536_v40 }
 0x4ea   :  { %v3580_v42 = vpop.f32.mrf.mxu0 }
 0x4eb   :  { %v3581_v45 = vadd.f32 %v3580_v42, %v3538_v9 }
 0x524   :  { %v3617_v38 = vpop.f32.mrf.mxu1 }
 0x525   :  { %v3618_v44 = vadd.f32 %v3617_v38, %v3575_v37 }
 0x526   :  { %v3619_v48 = vpop.f32.mrf.mxu1 }
 0x527   :  { %3626 = vst [vmem:[#allocation17] sm:$0xff] %v3618_v44  ;;  %v3620_v7 = vadd.f32 %v3619_v48, %v3577_v41 }
 0x528   :  { %v3621_v47 = vpop.f32.mrf.mxu1 }
 0x529   :  { %3627 = vst [vmem:[#allocation17 + $0x8] sm:$0xff] %v3620_v7  ;;  %v3622_v50 = vadd.f32 %v3621_v47, %v3579_v49 }
 0x52a   :  { %v3623_v51 = vpop.f32.mrf.mxu1 }
 0x52b   :  { %3628 = vst [vmem:[#allocation17 + $0x10] sm:$0xff] %v3622_v50  ;;  %v3624_v52 = vadd.f32 %v3623_v51, %v3581_v45 }
 0x52d   :  { %3629 = vst [vmem:[#allocation17 + $0x18] sm:$0xff] %v3624_v52 }
 0x52e   :  { %4576 = shalt.err (!%p4573_p2)
}
 0x52f   :  { %3641 = dma.vmem_to_hbm [thread:$0]  %s3636_s26, 512, %s4825_s11, [#allocation5], %s4602_s1, %s4602_s1, %s4603_s13  }
 0x530   :  { %4595 = dma.done.wait [#allocation5], 512  }
 0x531   :  { %4596 = vsyncadd [#allocation5], 4294966784 }
 0x532   :  { %3645 = vsyncpa [#allocation4], 1 }
 0x533   :  { %3646 = vsyncpa [#allocation7], 1 }
 0x534   :  { %3647 = vsyncpa [#allocation10], 1 }
 0x535   :  { %3648 = vsyncpa [#allocation13], 1 }
 0x536   :  { %3649 = vsyncpa [#allocation16], 1 }
 0x537   :  { %3650 = vsyncpa [#allocation5], 1 }

</bundles_post_ra>
